<compile_context>
chip_gen: v5e
topology: v5e:2x2
jax: 0.10.0
libtpu: 0.0.40
codegen_flags: <defaults>
</compile_context>

<pallas_src>
import jax
import jax.numpy as jnp
from jax.experimental import pallas as pl
from jax.experimental.pallas import tpu as pltpu


def _round_up(x, m):
    return ((x + m - 1) // m) * m


def _make_kernel(TB, K, Vp, Dp, inv_k):
    """Kernel for a fixed batch tile TB, negatives K, padded vocab Vp, dim Dp."""

    def fold8(x):
        # (TB, Vp) -> (8, Vp): sum sublane groups with static, aligned slices
        # (pure VPU adds; keeps the accumulator lane-dense).
        acc = x[0:8, :]
        for g in range(1, TB // 8):
            acc = acc + x[g * 8:(g + 1) * 8, :]
        return acc

    def kernel(pos_u_ref, pos_v_ref, neg_v_ref,   # (TB,1)/(TB,1)/(TB,K) int32, VMEM
               u_tbl_ref, vt_tbl_ref,             # (Vp,Dp) / (Dp,Vp) f32, VMEM (full tables)
               pos_out_ref, neg_out_ref):         # (8,Vp) resident accumulators
        # Zero the resident accumulators on the first step of the reduction axis.
        @pl.when(pl.program_id(1) == 0)
        def _():
            pos_out_ref[...] = jnp.zeros_like(pos_out_ref)
            neg_out_ref[...] = jnp.zeros_like(neg_out_ref)

        vocab_ids = jax.lax.broadcasted_iota(jnp.int32, (TB, Vp), 1)

        # Gather the u rows with a one-hot matmul on the MXU (no row DMAs).
        oh_u = (vocab_ids == pos_u_ref[...]).astype(jnp.float32)        # (TB, Vp)
        u_rows = jnp.dot(oh_u, u_tbl_ref[...],
                         preferred_element_type=jnp.float32,
                         precision=jax.lax.Precision.HIGHEST)           # (TB, Dp)

        # Scores against the WHOLE v-table in one MXU pass.
        scores = jnp.dot(u_rows, vt_tbl_ref[...],
                         preferred_element_type=jnp.float32,
                         precision=jax.lax.Precision.HIGHEST)           # (TB, Vp)
        s = jnp.clip(scores, -10.0, 10.0)
        f_pos = jnp.log1p(jnp.exp(-s))        # -logsigmoid(s)
        f_neg = s + f_pos                     # -logsigmoid(-s) == log1p(exp(s))

        # Positive loss: one-hot select the pos_v column per sample.
        sel_pos = (vocab_ids == pos_v_ref[...]).astype(jnp.float32)
        pos_out_ref[...] += fold8(sel_pos * f_pos)

        # Negative loss: select the K negative columns per sample; fold per k so
        # live vreg ranges stay small even for large TB (duplicates handled
        # exactly like the PyTorch bmm + mean, padded rows select nothing).
        neg_fold = fold8((vocab_ids == neg_v_ref[:, 0:1]).astype(jnp.float32) * f_neg)
        for k in range(1, K):
            neg_fold = neg_fold + fold8(
                (vocab_ids == neg_v_ref[:, k:k + 1]).astype(jnp.float32) * f_neg)
        neg_out_ref[...] += neg_fold * inv_k

    return kernel


def skipgram_forward(u_weight, v_weight, pos_u, pos_v, neg_v, *, tile_b=128):
    B = int(pos_u.shape[0])
    K = int(neg_v.shape[1])
    V, D = u_weight.shape

    # Lane-dense padded table layout (zero pad rows/cols never change a score).
    Dp = _round_up(max(int(D), 128), 128)
    Vp = _round_up(max(int(V), 128), 128)

    # VMEM-resident fast path only; budget sized for the smallest generation (v7x).
    table_bytes = 2 * Vp * Dp * 4
    if table_bytes > 40 * 2 ** 20:
        # TODO(synk): HBM-table fallback with aggregated (single-semaphore) gather DMAs.
        raise NotImplementedError("vocab too large for the VMEM-resident fast path")

    # Batch tiling: TB multiple of 8; pad the batch (never shrink TB for awkward B).
    TB = _round_up(min(int(tile_b), _round_up(B, 8)), 8)
    n_tiles = -(-B // TB)
    n_outer = 2 if n_tiles >= 2 else 1          # megacore-parallel axis (v7x)
    n_inner = -(-n_tiles // n_outer)
    Bp = TB * n_inner * n_outer

    # Padded operands.  Padded pos_v / neg_v entries point at column Vp, which
    # matches no vocab id -> zero contribution; padded pos_u rows use row 0
    # (their scores are computed but never selected).
    u_tbl = jnp.zeros((Vp, Dp), jnp.float32).at[:V, :D].set(u_weight.astype(jnp.float32))
    vt_tbl = jnp.zeros((Dp, Vp), jnp.float32).at[:D, :V].set(v_weight.astype(jnp.float32).T)
    # TODO(synk): bf16 table ingest (halves VMEM/HBM traffic on v6e/v7x).

    pu = jnp.zeros((Bp, 1), jnp.int32).at[:B, 0].set(pos_u.astype(jnp.int32))
    pv = jnp.full((Bp, 1), Vp, jnp.int32).at[:B, 0].set(pos_v.astype(jnp.int32))
    nv = jnp.full((Bp, K), Vp, jnp.int32).at[:B, :].set(neg_v.astype(jnp.int32))

    batch_map = lambda o, i: (o * n_inner + i, 0)
    table_map = lambda o, i: (0, 0)
    out_map = lambda o, i: (o, 0)

    grid_spec = pltpu.PrefetchScalarGridSpec(
        num_scalar_prefetch=0,
        grid=(n_outer, n_inner),
        in_specs=[
            pl.BlockSpec((TB, 1), batch_map),     # pos_u indices
            pl.BlockSpec((TB, 1), batch_map),     # pos_v indices
            pl.BlockSpec((TB, K), batch_map),     # neg_v indices
            pl.BlockSpec((Vp, Dp), table_map),    # u table (VMEM resident)
            pl.BlockSpec((Dp, Vp), table_map),    # v table, pre-transposed (VMEM resident)
        ],
        out_specs=(pl.BlockSpec((8, Vp), out_map),
                   pl.BlockSpec((8, Vp), out_map)),
    )

    block_bytes = 4 * (TB * (2 + K) + 2 * 8 * Vp)
    vmem_limit = int(min(48 * 2 ** 20,
                         max(8 * 2 ** 20, 2 * (table_bytes + block_bytes) + 4 * 2 ** 20)))

    pos_part, neg_part = pl.pallas_call(
        _make_kernel(TB, K, Vp, Dp, 1.0 / K),
        out_shape=(jax.ShapeDtypeStruct((8 * n_outer, Vp), jnp.float32),
                   jax.ShapeDtypeStruct((8 * n_outer, Vp), jnp.float32)),
        grid_spec=grid_spec,
        compiler_params=pltpu.CompilerParams(
            dimension_semantics=("parallel", "arbitrary"),
            vmem_limit_bytes=vmem_limit),
    )(pu, pv, nv, u_tbl, vt_tbl)

    # Tiny wrapper glue: lane-dense partials -> scalar means.
    pos_loss = jnp.sum(pos_part) / B
    neg_loss = jnp.sum(neg_part) / B
    return pos_loss + neg_loss, pos_loss, neg_loss


def skipgram_reference(u_weight, v_weight, pos_u, pos_v, neg_v):
    """Pure-JAX reference mirroring the PyTorch forward (exact f32 elementwise)."""
    emb_u = u_weight[pos_u]                       # (B, D)
    emb_v = v_weight[pos_v]                       # (B, D)
    emb_neg = v_weight[neg_v]                     # (B, K, D)

    score = jnp.sum(emb_u * emb_v, axis=1)
    score = jnp.clip(score, -10.0, 10.0)
    score = -jax.nn.log_sigmoid(score)

    neg_score = jnp.sum(emb_neg * emb_u[:, None, :], axis=-1)
    neg_score = jnp.clip(neg_score, -10.0, 10.0)
    neg_score = -jnp.mean(jax.nn.log_sigmoid(-neg_score), axis=1)

    return (jnp.mean(score + neg_score), jnp.mean(score), jnp.mean(neg_score))


if __name__ == "__main__":
    emb_size = 64          # vocab size
    emb_dimension = 32     # embedding dim D (padded to 128 lanes internally)
    B = 32                 # batch of (center, context) pairs
    K = 8                  # negative samples per pair

    key = jax.random.PRNGKey(0)
    k_u, k_v, k_pu, k_pv, k_nv = jax.random.split(key, 5)

    # u_embeddings ~ Uniform(-1/D, 1/D) as in the PyTorch __init__.  The module
    # zero-inits v_embeddings; random values are used here only so the check
    # exercises non-trivial arithmetic (the forward pass is init-agnostic).
    initrange = 1.0 / emb_dimension
    u_weight = jax.random.uniform(
        k_u, (emb_size, emb_dimension), jnp.float32, -initrange, initrange)
    v_weight = jax.random.uniform(
        k_v, (emb_size, emb_dimension), jnp.float32, -1.0, 1.0)

    pos_u = jax.random.randint(k_pu, (B,), 0, emb_size, dtype=jnp.int32)
    pos_v = jax.random.randint(k_pv, (B,), 0, emb_size, dtype=jnp.int32)
    neg_v = jax.random.randint(k_nv, (B, K), 0, emb_size, dtype=jnp.int32)

    fwd = jax.jit(skipgram_forward)
    total, pos_loss, neg_loss = fwd(u_weight, v_weight, pos_u, pos_v, neg_v)
    jax.block_until_ready((total, pos_loss, neg_loss))

    ref_total, ref_pos, ref_neg = skipgram_reference(
        u_weight, v_weight, pos_u, pos_v, neg_v)

    assert jnp.allclose(total, ref_total, rtol=1e-5, atol=2e-5), (total, ref_total)
    assert jnp.allclose(pos_loss, ref_pos, rtol=1e-5, atol=2e-5), (pos_loss, ref_pos)
    assert jnp.allclose(neg_loss, ref_neg, rtol=1e-5, atol=2e-5), (neg_loss, ref_neg)

    print("KERNEL_OK")
</pallas_src>

<mosaic_0001>
module attributes {stable_mosaic.version = 11 : i64} {
  func.func @kernel(%arg0: i32, %arg1: i32, %arg2: memref<32x1xi32, #tpu.memory_space<vmem>>, %arg3: memref<32x1xi32, #tpu.memory_space<vmem>>, %arg4: memref<32x8xi32, #tpu.memory_space<vmem>>, %arg5: memref<128x128xf32, #tpu.memory_space<vmem>>, %arg6: memref<128x128xf32, #tpu.memory_space<vmem>>, %arg7: memref<8x128xf32, #tpu.memory_space<vmem>>, %arg8: memref<8x128xf32, #tpu.memory_space<vmem>>) attributes {dimension_semantics = [#tpu.dimension_semantics<parallel>, #tpu.dimension_semantics<arbitrary>], iteration_bounds = array<i64: 1, 1>, scalar_prefetch = 0 : i64, scratch_operands = 0 : i64, tpu.core_type = #tpu.core_type<tc>, window_params = [{transform_indices = @transform_0, window_bounds = array<i64: 32, 1>}, {transform_indices = @transform_1, window_bounds = array<i64: 32, 1>}, {transform_indices = @transform_2, window_bounds = array<i64: 32, 8>}, {pipeline_mode = #tpu.pipeline_mode<synchronous>, transform_indices = @transform_3, window_bounds = array<i64: 128, 128>}, {pipeline_mode = #tpu.pipeline_mode<synchronous>, transform_indices = @transform_4, window_bounds = array<i64: 128, 128>}, {transform_indices = @transform_5, window_bounds = array<i64: 8, 128>}, {transform_indices = @transform_6, window_bounds = array<i64: 8, 128>}]} {
    %c0_i32 = arith.constant 0 : i32
    %0 = arith.cmpi eq, %arg1, %c0_i32 : i32
    %1 = arith.extui %0 : i1 to i32
    %c0_i32_0 = arith.constant 0 : i32
    %2 = arith.cmpi ne, %1, %c0_i32_0 : i32
    scf.if %2 {
      %cst_30 = arith.constant 0.000000e+00 : f32
      %154 = vector.broadcast %cst_30 : f32 to vector<8x128xf32>
      %c0_31 = arith.constant 0 : index
      %c0_32 = arith.constant 0 : index
      %155 = vector.load %arg7[%c0_31, %c0_32] : memref<8x128xf32, #tpu.memory_space<vmem>>, vector<8x128xf32>
      tpu.vector_store %arg7[%c0_31, %c0_32], %154 {strides = array<i32>} : memref<8x128xf32, #tpu.memory_space<vmem>>, vector<8x128xf32>,
      %cst_33 = arith.constant 0.000000e+00 : f32
      %156 = vector.broadcast %cst_33 : f32 to vector<8x128xf32>
      %c0_34 = arith.constant 0 : index
      %c0_35 = arith.constant 0 : index
      %157 = vector.load %arg8[%c0_34, %c0_35] : memref<8x128xf32, #tpu.memory_space<vmem>>, vector<8x128xf32>
      tpu.vector_store %arg8[%c0_34, %c0_35], %156 {strides = array<i32>} : memref<8x128xf32, #tpu.memory_space<vmem>>, vector<8x128xf32>,
    } else {
    }
    %3 = tpu.iota {dimensions = array<i32: 1>} : vector<32x128xi32>
    %c0 = arith.constant 0 : index
    %c0_1 = arith.constant 0 : index
    %4 = vector.load %arg2[%c0, %c0_1] : memref<32x1xi32, #tpu.memory_space<vmem>>, vector<32x1xi32>
    %5 = vector.broadcast %4 : vector<32x1xi32> to vector<32x128xi32>
    %6 = arith.cmpi eq, %3, %5 : vector<32x128xi32>
    %7 = arith.extui %6 : vector<32x128xi1> to vector<32x128xi32>
    %8 = arith.sitofp %7 : vector<32x128xi32> to vector<32x128xf32>
    %c0_2 = arith.constant 0 : index
    %c0_3 = arith.constant 0 : index
    %9 = vector.load %arg5[%c0_2, %c0_3] : memref<128x128xf32, #tpu.memory_space<vmem>>, vector<128x128xf32>
    %cst = arith.constant dense<0.000000e+00> : vector<32x128xf32>
    %10 = tpu.matmul %8, %9, %cst {dimension_numbers = #tpu.dot_dimension_numbers<[1], [0], [0], [1], [0, 0, 1, 1], [], []>, precision = #tpu.contract_precision<fp32>} : vector<32x128xf32>, vector<128x128xf32>, vector<32x128xf32> -> vector<32x128xf32>
    %c0_4 = arith.constant 0 : index
    %c0_5 = arith.constant 0 : index
    %11 = vector.load %arg6[%c0_4, %c0_5] : memref<128x128xf32, #tpu.memory_space<vmem>>, vector<128x128xf32>
    %cst_6 = arith.constant dense<0.000000e+00> : vector<32x128xf32>
    %12 = tpu.matmul %10, %11, %cst_6 {dimension_numbers = #tpu.dot_dimension_numbers<[1], [0], [0], [1], [0, 0, 1, 1], [], []>, precision = #tpu.contract_precision<fp32>} : vector<32x128xf32>, vector<128x128xf32>, vector<32x128xf32> -> vector<32x128xf32>
    %cst_7 = arith.constant -1.000000e+01 : f32
    %cst_8 = arith.constant 1.000000e+01 : f32
    %13 = vector.broadcast %cst_7 : f32 to vector<32x128xf32>
    %14 = arith.maximumf %13, %12 : vector<32x128xf32>
    %15 = vector.broadcast %cst_8 : f32 to vector<32x128xf32>
    %16 = arith.minimumf %15, %14 : vector<32x128xf32>
    %cst_9 = arith.constant 0.000000e+00 : f32
    %17 = vector.broadcast %cst_9 : f32 to vector<32x128xf32>
    %18 = arith.subf %17, %16 : vector<32x128xf32>
    %19 = math.exp %18 : vector<32x128xf32>
    %20 = math.log1p %19 : vector<32x128xf32>
    %21 = arith.addf %16, %20 : vector<32x128xf32>
    %c0_10 = arith.constant 0 : index
    %c0_11 = arith.constant 0 : index
    %22 = vector.load %arg3[%c0_10, %c0_11] : memref<32x1xi32, #tpu.memory_space<vmem>>, vector<32x1xi32>
    %23 = vector.broadcast %22 : vector<32x1xi32> to vector<32x128xi32>
    %24 = arith.cmpi eq, %3, %23 : vector<32x128xi32>
    %25 = arith.extui %24 : vector<32x128xi1> to vector<32x128xi32>
    %26 = arith.sitofp %25 : vector<32x128xi32> to vector<32x128xf32>
    %c0_12 = arith.constant 0 : index
    %c0_13 = arith.constant 0 : index
    %27 = vector.load %arg7[%c0_12, %c0_13] : memref<8x128xf32, #tpu.memory_space<vmem>>, vector<8x128xf32>
    %28 = arith.mulf %26, %20 : vector<32x128xf32>
    %29 = vector.extract_strided_slice %28 {offsets = [0, 0], sizes = [8, 128], strides = [1, 1]} : vector<32x128xf32> to vector<8x128xf32>
    %30 = vector.extract_strided_slice %28 {offsets = [8, 0], sizes = [8, 128], strides = [1, 1]} : vector<32x128xf32> to vector<8x128xf32>
    %31 = arith.addf %29, %30 : vector<8x128xf32>
    %32 = vector.extract_strided_slice %28 {offsets = [16, 0], sizes = [8, 128], strides = [1, 1]} : vector<32x128xf32> to vector<8x128xf32>
    %33 = arith.addf %31, %32 : vector<8x128xf32>
    %34 = vector.extract_strided_slice %28 {offsets = [24, 0], sizes = [8, 128], strides = [1, 1]} : vector<32x128xf32> to vector<8x128xf32>
    %35 = arith.addf %33, %34 : vector<8x128xf32>
    %36 = arith.addf %27, %35 : vector<8x128xf32>
    %c0_14 = arith.constant 0 : index
    %c0_15 = arith.constant 0 : index
    %37 = vector.load %arg7[%c0_14, %c0_15] : memref<8x128xf32, #tpu.memory_space<vmem>>, vector<8x128xf32>
    tpu.vector_store %arg7[%c0_14, %c0_15], %36 {strides = array<i32>} : memref<8x128xf32, #tpu.memory_space<vmem>>, vector<8x128xf32>,
    %c0_16 = arith.constant 0 : index
    %c0_17 = arith.constant 0 : index
    %38 = vector.load %arg4[%c0_16, %c0_17] : memref<32x8xi32, #tpu.memory_space<vmem>>, vector<32x1xi32>
    %39 = vector.broadcast %38 : vector<32x1xi32> to vector<32x128xi32>
    %40 = arith.cmpi eq, %3, %39 : vector<32x128xi32>
    %41 = arith.extui %40 : vector<32x128xi1> to vector<32x128xi32>
    %42 = arith.sitofp %41 : vector<32x128xi32> to vector<32x128xf32>
    %43 = arith.mulf %42, %21 : vector<32x128xf32>
    %44 = vector.extract_strided_slice %43 {offsets = [0, 0], sizes = [8, 128], strides = [1, 1]} : vector<32x128xf32> to vector<8x128xf32>
    %45 = vector.extract_strided_slice %43 {offsets = [8, 0], sizes = [8, 128], strides = [1, 1]} : vector<32x128xf32> to vector<8x128xf32>
    %46 = arith.addf %44, %45 : vector<8x128xf32>
    %47 = vector.extract_strided_slice %43 {offsets = [16, 0], sizes = [8, 128], strides = [1, 1]} : vector<32x128xf32> to vector<8x128xf32>
    %48 = arith.addf %46, %47 : vector<8x128xf32>
    %49 = vector.extract_strided_slice %43 {offsets = [24, 0], sizes = [8, 128], strides = [1, 1]} : vector<32x128xf32> to vector<8x128xf32>
    %50 = arith.addf %48, %49 : vector<8x128xf32>
    %c0_18 = arith.constant 0 : index
    %c1 = arith.constant 1 : index
    %51 = vector.load %arg4[%c0_18, %c1] : memref<32x8xi32, #tpu.memory_space<vmem>>, vector<32x1xi32>
    %52 = vector.broadcast %51 : vector<32x1xi32> to vector<32x128xi32>
    %53 = arith.cmpi eq, %3, %52 : vector<32x128xi32>
    %54 = arith.extui %53 : vector<32x128xi1> to vector<32x128xi32>
    %55 = arith.sitofp %54 : vector<32x128xi32> to vector<32x128xf32>
    %56 = arith.mulf %55, %21 : vector<32x128xf32>
    %57 = vector.extract_strided_slice %56 {offsets = [0, 0], sizes = [8, 128], strides = [1, 1]} : vector<32x128xf32> to vector<8x128xf32>
    %58 = vector.extract_strided_slice %56 {offsets = [8, 0], sizes = [8, 128], strides = [1, 1]} : vector<32x128xf32> to vector<8x128xf32>
    %59 = arith.addf %57, %58 : vector<8x128xf32>
    %60 = vector.extract_strided_slice %56 {offsets = [16, 0], sizes = [8, 128], strides = [1, 1]} : vector<32x128xf32> to vector<8x128xf32>
    %61 = arith.addf %59, %60 : vector<8x128xf32>
    %62 = vector.extract_strided_slice %56 {offsets = [24, 0], sizes = [8, 128], strides = [1, 1]} : vector<32x128xf32> to vector<8x128xf32>
    %63 = arith.addf %61, %62 : vector<8x128xf32>
    %64 = arith.addf %50, %63 : vector<8x128xf32>
    %c0_19 = arith.constant 0 : index
    %c2 = arith.constant 2 : index
    %65 = vector.load %arg4[%c0_19, %c2] : memref<32x8xi32, #tpu.memory_space<vmem>>, vector<32x1xi32>
    %66 = vector.broadcast %65 : vector<32x1xi32> to vector<32x128xi32>
    %67 = arith.cmpi eq, %3, %66 : vector<32x128xi32>
    %68 = arith.extui %67 : vector<32x128xi1> to vector<32x128xi32>
    %69 = arith.sitofp %68 : vector<32x128xi32> to vector<32x128xf32>
    %70 = arith.mulf %69, %21 : vector<32x128xf32>
    %71 = vector.extract_strided_slice %70 {offsets = [0, 0], sizes = [8, 128], strides = [1, 1]} : vector<32x128xf32> to vector<8x128xf32>
    %72 = vector.extract_strided_slice %70 {offsets = [8, 0], sizes = [8, 128], strides = [1, 1]} : vector<32x128xf32> to vector<8x128xf32>
    %73 = arith.addf %71, %72 : vector<8x128xf32>
    %74 = vector.extract_strided_slice %70 {offsets = [16, 0], sizes = [8, 128], strides = [1, 1]} : vector<32x128xf32> to vector<8x128xf32>
    %75 = arith.addf %73, %74 : vector<8x128xf32>
    %76 = vector.extract_strided_slice %70 {offsets = [24, 0], sizes = [8, 128], strides = [1, 1]} : vector<32x128xf32> to vector<8x128xf32>
    %77 = arith.addf %75, %76 : vector<8x128xf32>
    %78 = arith.addf %64, %77 : vector<8x128xf32>
    %c0_20 = arith.constant 0 : index
    %c3 = arith.constant 3 : index
    %79 = vector.load %arg4[%c0_20, %c3] : memref<32x8xi32, #tpu.memory_space<vmem>>, vector<32x1xi32>
    %80 = vector.broadcast %79 : vector<32x1xi32> to vector<32x128xi32>
    %81 = arith.cmpi eq, %3, %80 : vector<32x128xi32>
    %82 = arith.extui %81 : vector<32x128xi1> to vector<32x128xi32>
    %83 = arith.sitofp %82 : vector<32x128xi32> to vector<32x128xf32>
    %84 = arith.mulf %83, %21 : vector<32x128xf32>
    %85 = vector.extract_strided_slice %84 {offsets = [0, 0], sizes = [8, 128], strides = [1, 1]} : vector<32x128xf32> to vector<8x128xf32>
    %86 = vector.extract_strided_slice %84 {offsets = [8, 0], sizes = [8, 128], strides = [1, 1]} : vector<32x128xf32> to vector<8x128xf32>
    %87 = arith.addf %85, %86 : vector<8x128xf32>
    %88 = vector.extract_strided_slice %84 {offsets = [16, 0], sizes = [8, 128], strides = [1, 1]} : vector<32x128xf32> to vector<8x128xf32>
    %89 = arith.addf %87, %88 : vector<8x128xf32>
    %90 = vector.extract_strided_slice %84 {offsets = [24, 0], sizes = [8, 128], strides = [1, 1]} : vector<32x128xf32> to vector<8x128xf32>
    %91 = arith.addf %89, %90 : vector<8x128xf32>
    %92 = arith.addf %78, %91 : vector<8x128xf32>
    %c0_21 = arith.constant 0 : index
    %c4 = arith.constant 4 : index
    %93 = vector.load %arg4[%c0_21, %c4] : memref<32x8xi32, #tpu.memory_space<vmem>>, vector<32x1xi32>
    %94 = vector.broadcast %93 : vector<32x1xi32> to vector<32x128xi32>
    %95 = arith.cmpi eq, %3, %94 : vector<32x128xi32>
    %96 = arith.extui %95 : vector<32x128xi1> to vector<32x128xi32>
    %97 = arith.sitofp %96 : vector<32x128xi32> to vector<32x128xf32>
    %98 = arith.mulf %97, %21 : vector<32x128xf32>
    %99 = vector.extract_strided_slice %98 {offsets = [0, 0], sizes = [8, 128], strides = [1, 1]} : vector<32x128xf32> to vector<8x128xf32>
    %100 = vector.extract_strided_slice %98 {offsets = [8, 0], sizes = [8, 128], strides = [1, 1]} : vector<32x128xf32> to vector<8x128xf32>
    %101 = arith.addf %99, %100 : vector<8x128xf32>
    %102 = vector.extract_strided_slice %98 {offsets = [16, 0], sizes = [8, 128], strides = [1, 1]} : vector<32x128xf32> to vector<8x128xf32>
    %103 = arith.addf %101, %102 : vector<8x128xf32>
    %104 = vector.extract_strided_slice %98 {offsets = [24, 0], sizes = [8, 128], strides = [1, 1]} : vector<32x128xf32> to vector<8x128xf32>
    %105 = arith.addf %103, %104 : vector<8x128xf32>
    %106 = arith.addf %92, %105 : vector<8x128xf32>
    %c0_22 = arith.constant 0 : index
    %c5 = arith.constant 5 : index
    %107 = vector.load %arg4[%c0_22, %c5] : memref<32x8xi32, #tpu.memory_space<vmem>>, vector<32x1xi32>
    %108 = vector.broadcast %107 : vector<32x1xi32> to vector<32x128xi32>
    %109 = arith.cmpi eq, %3, %108 : vector<32x128xi32>
    %110 = arith.extui %109 : vector<32x128xi1> to vector<32x128xi32>
    %111 = arith.sitofp %110 : vector<32x128xi32> to vector<32x128xf32>
    %112 = arith.mulf %111, %21 : vector<32x128xf32>
    %113 = vector.extract_strided_slice %112 {offsets = [0, 0], sizes = [8, 128], strides = [1, 1]} : vector<32x128xf32> to vector<8x128xf32>
    %114 = vector.extract_strided_slice %112 {offsets = [8, 0], sizes = [8, 128], strides = [1, 1]} : vector<32x128xf32> to vector<8x128xf32>
    %115 = arith.addf %113, %114 : vector<8x128xf32>
    %116 = vector.extract_strided_slice %112 {offsets = [16, 0], sizes = [8, 128], strides = [1, 1]} : vector<32x128xf32> to vector<8x128xf32>
    %117 = arith.addf %115, %116 : vector<8x128xf32>
    %118 = vector.extract_strided_slice %112 {offsets = [24, 0], sizes = [8, 128], strides = [1, 1]} : vector<32x128xf32> to vector<8x128xf32>
    %119 = arith.addf %117, %118 : vector<8x128xf32>
    %120 = arith.addf %106, %119 : vector<8x128xf32>
    %c0_23 = arith.constant 0 : index
    %c6 = arith.constant 6 : index
    %121 = vector.load %arg4[%c0_23, %c6] : memref<32x8xi32, #tpu.memory_space<vmem>>, vector<32x1xi32>
    %122 = vector.broadcast %121 : vector<32x1xi32> to vector<32x128xi32>
    %123 = arith.cmpi eq, %3, %122 : vector<32x128xi32>
    %124 = arith.extui %123 : vector<32x128xi1> to vector<32x128xi32>
    %125 = arith.sitofp %124 : vector<32x128xi32> to vector<32x128xf32>
    %126 = arith.mulf %125, %21 : vector<32x128xf32>
    %127 = vector.extract_strided_slice %126 {offsets = [0, 0], sizes = [8, 128], strides = [1, 1]} : vector<32x128xf32> to vector<8x128xf32>
    %128 = vector.extract_strided_slice %126 {offsets = [8, 0], sizes = [8, 128], strides = [1, 1]} : vector<32x128xf32> to vector<8x128xf32>
    %129 = arith.addf %127, %128 : vector<8x128xf32>
    %130 = vector.extract_strided_slice %126 {offsets = [16, 0], sizes = [8, 128], strides = [1, 1]} : vector<32x128xf32> to vector<8x128xf32>
    %131 = arith.addf %129, %130 : vector<8x128xf32>
    %132 = vector.extract_strided_slice %126 {offsets = [24, 0], sizes = [8, 128], strides = [1, 1]} : vector<32x128xf32> to vector<8x128xf32>
    %133 = arith.addf %131, %132 : vector<8x128xf32>
    %134 = arith.addf %120, %133 : vector<8x128xf32>
    %c0_24 = arith.constant 0 : index
    %c7 = arith.constant 7 : index
    %135 = vector.load %arg4[%c0_24, %c7] : memref<32x8xi32, #tpu.memory_space<vmem>>, vector<32x1xi32>
    %136 = vector.broadcast %135 : vector<32x1xi32> to vector<32x128xi32>
    %137 = arith.cmpi eq, %3, %136 : vector<32x128xi32>
    %138 = arith.extui %137 : vector<32x128xi1> to vector<32x128xi32>
    %139 = arith.sitofp %138 : vector<32x128xi32> to vector<32x128xf32>
    %140 = arith.mulf %139, %21 : vector<32x128xf32>
    %141 = vector.extract_strided_slice %140 {offsets = [0, 0], sizes = [8, 128], strides = [1, 1]} : vector<32x128xf32> to vector<8x128xf32>
    %142 = vector.extract_strided_slice %140 {offsets = [8, 0], sizes = [8, 128], strides = [1, 1]} : vector<32x128xf32> to vector<8x128xf32>
    %143 = arith.addf %141, %142 : vector<8x128xf32>
    %144 = vector.extract_strided_slice %140 {offsets = [16, 0], sizes = [8, 128], strides = [1, 1]} : vector<32x128xf32> to vector<8x128xf32>
    %145 = arith.addf %143, %144 : vector<8x128xf32>
    %146 = vector.extract_strided_slice %140 {offsets = [24, 0], sizes = [8, 128], strides = [1, 1]} : vector<32x128xf32> to vector<8x128xf32>
    %147 = arith.addf %145, %146 : vector<8x128xf32>
    %148 = arith.addf %134, %147 : vector<8x128xf32>
    %c0_25 = arith.constant 0 : index
    %c0_26 = arith.constant 0 : index
    %149 = vector.load %arg8[%c0_25, %c0_26] : memref<8x128xf32, #tpu.memory_space<vmem>>, vector<8x128xf32>
    %cst_27 = arith.constant 1.250000e-01 : f32
    %150 = vector.broadcast %cst_27 : f32 to vector<8x128xf32>
    %151 = arith.mulf %148, %150 : vector<8x128xf32>
    %152 = arith.addf %149, %151 : vector<8x128xf32>
    %c0_28 = arith.constant 0 : index
    %c0_29 = arith.constant 0 : index
    %153 = vector.load %arg8[%c0_28, %c0_29] : memref<8x128xf32, #tpu.memory_space<vmem>>, vector<8x128xf32>
    tpu.vector_store %arg8[%c0_28, %c0_29], %152 {strides = array<i32>} : memref<8x128xf32, #tpu.memory_space<vmem>>, vector<8x128xf32>,
    return
  }
  func.func @transform_0(%arg0: i32, %arg1: i32) -> (i32, i32) {
    %c1_i32 = arith.constant 1 : i32
    %0 = arith.muli %arg0, %c1_i32 : i32
    %1 = arith.addi %0, %arg1 : i32
    %c0_i32 = arith.constant 0 : i32
    %c0_i32_0 = arith.constant 0 : i32
    return %1, %c0_i32 : i32, i32
  }
  func.func @transform_1(%arg0: i32, %arg1: i32) -> (i32, i32) {
    %c1_i32 = arith.constant 1 : i32
    %0 = arith.muli %arg0, %c1_i32 : i32
    %1 = arith.addi %0, %arg1 : i32
    %c0_i32 = arith.constant 0 : i32
    %c0_i32_0 = arith.constant 0 : i32
    return %1, %c0_i32 : i32, i32
  }
  func.func @transform_2(%arg0: i32, %arg1: i32) -> (i32, i32) {
    %c1_i32 = arith.constant 1 : i32
    %0 = arith.muli %arg0, %c1_i32 : i32
    %1 = arith.addi %0, %arg1 : i32
    %c0_i32 = arith.constant 0 : i32
    %c0_i32_0 = arith.constant 0 : i32
    return %1, %c0_i32 : i32, i32
  }
  func.func @transform_3(%arg0: i32, %arg1: i32) -> (i32, i32) {
    %c0_i32 = arith.constant 0 : i32
    %c0_i32_0 = arith.constant 0 : i32
    %c0_i32_1 = arith.constant 0 : i32
    return %c0_i32, %c0_i32_0 : i32, i32
  }
  func.func @transform_4(%arg0: i32, %arg1: i32) -> (i32, i32) {
    %c0_i32 = arith.constant 0 : i32
    %c0_i32_0 = arith.constant 0 : i32
    %c0_i32_1 = arith.constant 0 : i32
    return %c0_i32, %c0_i32_0 : i32, i32
  }
  func.func @transform_5(%arg0: i32, %arg1: i32) -> (i32, i32) {
    %c0_i32 = arith.constant 0 : i32
    %c0_i32_0 = arith.constant 0 : i32
    return %arg0, %c0_i32 : i32, i32
  }
  func.func @transform_6(%arg0: i32, %arg1: i32) -> (i32, i32) {
    %c0_i32 = arith.constant 0 : i32
    %c0_i32_0 = arith.constant 0 : i32
    return %arg0, %c0_i32 : i32, i32
  }
}

</mosaic_0001>

<bundles_post_ra>
// kernel: skipgram_forward.1
= control target key start
LH: loop header
LB: loop body
LE: loop exit
PB: predicated region body
PF: predicated region fallthrough
CT: control target
= control target key end

     0   :  { %v1515_v0 = vmov 0   ;;  %s2590_s0 = inlined_call_operand.vmem [shape: s32[32,1], index: 0, kind: input, shape index: {}]   ;;  %s2591_s3 = inlined_call_operand.vmem [shape: f32[128,128], index: 3, kind: input, shape index: {}]   ;;  %s2592_s1 = inlined_call_operand.vmem [shape: s32[32,1], index: 1, kind: input, shape index: {}]   ;;  %s2593_s2 = inlined_call_operand.vmem [shape: s32[32,8], index: 2, kind: input, shape index: {}]   ;;  %s2594_s4 = inlined_call_operand.vmem [shape: f32[128,128], index: 4, kind: input, shape index: {}]   ;;  %s2595_s5 = inlined_call_operand.vmem [shape: f32[8,128], index: 5, kind: output, shape index: {0}]   ;;  %s2596_s6 = inlined_call_operand.vmem [shape: f32[8,128], index: 6, kind: output, shape index: {1}]  }
   0x1   :  { %1478 = vset.pattern.permute.xlu1 %v1515_v0  ;;  %1477 = vset.pattern.permute.xlu0 %v1515_v0  ;;  %v98_v1 = vld [vmem:[%s2590_s0 + $0x10] sm:$0xff]  ;;  %v96_v2 = vld [vmem:[%s2590_s0] sm:$0xff]  ;;  %v139_v3 = vld [vmem:[%s2591_s3 + $0x78] sm:$0xff] }
   0x2   :  { %107 = vperm.xlu1 %1478, %v98_v1   ;;  %101 = vperm.xlu0 %1477, %v96_v2   ;;  %v1569_v4 = vand.u32 4294901760, %v139_v3  ;;  %v138_v5 = vld [vmem:[%s2591_s3 + $0x70] sm:$0xff]  ;;  %v137_v6 = vld [vmem:[%s2591_s3 + $0x68] sm:$0xff]  ;;  %v136_v7 = vld [vmem:[%s2591_s3 + $0x60] sm:$0xff] }
   0x3   :  { %1479 = vset.pattern.permute.xlu2 %v1515_v0  ;;  %v1580_v8 = vand.u32 4294901760, %v138_v5  ;;  %v1582_v9 = vand.u32 4294901760, %v137_v6  ;;  %v1584_v10 = vand.u32 4294901760, %v136_v7  ;;  %v135_v11 = vld [vmem:[%s2591_s3 + $0x58] sm:$0xff]  ;;  %v134_v12 = vld [vmem:[%s2591_s3 + $0x50] sm:$0xff]  ;;  %v133_v13 = vld [vmem:[%s2591_s3 + $0x48] sm:$0xff] }
   0x4   :  { %v1596_v14 = vsub.f32 %v139_v3, %v1569_v4  ;;  %388 = vmatpush.msra.mxu3 %v1569_v4  ;;  %v1599_v15 = vand.u32 4294901760, %v135_v11  ;;  %141 = vmatpush.msra.mxu0 %v1569_v4  ;;  %v1602_v16 = vand.u32 4294901760, %v134_v12  ;;  %v1604_v17 = vand.u32 4294901760, %v133_v13  ;;  %v132_v18 = vld [vmem:[%s2591_s3 + $0x40] sm:$0xff]  ;;  %v99_v19 = vld [vmem:[%s2590_s0 + $0x18] sm:$0xff]  ;;  %v97_v20 = vld [vmem:[%s2590_s0 + $0x8] sm:$0xff] }
   0x5   :  { %v1616_v21 = vsub.f32 %v138_v5, %v1580_v8  ;;  %v1619_v22 = vsub.f32 %v137_v6, %v1582_v9  ;;  %v1622_v23 = vsub.f32 %v136_v7, %v1584_v10  ;;  %v1630_v26 = vand.u32 4294901760, %v132_v18  ;;  %v131_v36 = vld [vmem:[%s2591_s3 + $0x38] sm:$0xff]  ;;  %v130_v39 = vld [vmem:[%s2591_s3 + $0x30] sm:$0xff]  ;;  %v129_v40 = vld [vmem:[%s2591_s3 + $0x28] sm:$0xff] }
   0x6   :  { %v207_v24 = vand.u32 4294901760, %v1596_v14  ;;  %320 = vmatpush.msra.mxu2 %v1596_v14  ;;  %390 = vmatpush.msra.mxu3 %v1580_v8  ;;  %v1628_v25 = vsub.f32 %v135_v11, %v1599_v15  ;;  %v1636_v30 = vsub.f32 %v134_v12, %v1602_v16  ;;  %v1643_v32 = vsub.f32 %v133_v13, %v1604_v17  ;;  %v128_v46 = vld [vmem:[%s2591_s3 + $0x20] sm:$0xff]  ;;  %v1087_v47 = vld [vmem:[%s2592_s1 + $0x18] sm:$0xff]  ;;  %v1086_v48 = vld [vmem:[%s2592_s1 + $0x10] sm:$0xff] }
   0x7   :  { %v213_v27 = vand.u32 4294901760, %v1616_v21  ;;  %v219_v28 = vand.u32 4294901760, %v1619_v22  ;;  %v225_v29 = vand.u32 4294901760, %v1622_v23  ;;  %143 = vmatpush.msra.mxu0 %v1580_v8  ;;  %v1659_v38 = vsub.f32 %v132_v18, %v1630_v26  ;;  %v127_v55 = vld [vmem:[%s2591_s3 + $0x18] sm:$0xff]  ;;  %v126_v61 = vld [vmem:[%s2591_s3 + $0x10] sm:$0xff]  ;;  %v125_v3 = vld [vmem:[%s2591_s3 + $0x8] sm:$0xff] }
   0x8   :  { %v208_v31 = vsub.f32 %v1596_v14, %v207_v24  ;;  %323 = vmatpush.msra.mxu2 %v1616_v21  ;;  %v231_v35 = vand.u32 4294901760, %v1628_v25  ;;  %392 = vmatpush.msra.mxu3 %v1582_v9  ;;  %v237_v43 = vand.u32 4294901760, %v1636_v30  ;;  %v243_v44 = vand.u32 4294901760, %v1643_v32  ;;  %v1746_v13 = vld [vmem:[%s2593_s2 + $0x10] sm:$0xff]  ;;  %v1751_v18 = vld [vmem:[%s2593_s2 + $0x8] sm:$0xff] }
   0x9   :  { %v214_v33 = vsub.f32 %v1616_v21, %v213_v27  ;;  %v220_v34 = vsub.f32 %v1619_v22, %v219_v28  ;;  %145 = vmatpush.msra.mxu0 %v1582_v9  ;;  %v226_v42 = vsub.f32 %v1622_v23, %v225_v29  ;;  %v1675_v45 = vand.u32 4294901760, %v131_v36 }
   0xa   :  { %110 = vperm.xlu1 %1478, %v99_v19   ;;  %104 = vperm.xlu0 %1477, %v97_v20   ;;  %v209_v37 = vand.u32 4294901760, %v208_v31  ;;  %v232_v50 = vsub.f32 %v1628_v25, %v231_v35  ;;  %v1691_v51 = vand.u32 4294901760, %v130_v39  ;;  %v1693_v52 = vand.u32 4294901760, %v129_v40 }
   0xb   :  { %v215_v41 = vand.u32 4294901760, %v214_v33  ;;  %326 = vmatpush.msra.mxu2 %v1619_v22  ;;  %394 = vmatpush.msra.mxu3 %v1584_v10  ;;  %v221_v49 = vand.u32 4294901760, %v220_v34  ;;  %v249_v53 = vand.u32 4294901760, %v1659_v38  ;;  %v1697_v54 = vsub.f32 %v131_v36, %v1675_v45 }
   0xc   :  { %210 = vmatpush.msra.mxu1 %v209_v37  ;;  %147 = vmatpush.msra.mxu0 %v1584_v10  ;;  %v227_v56 = vand.u32 4294901760, %v226_v42  ;;  %v238_v57 = vsub.f32 %v1636_v30, %v237_v43  ;;  %v1709_v58 = vsub.f32 %v130_v39, %v1691_v51  ;;  %v1711_v59 = vand.u32 4294901760, %v128_v46 }
   0xd   :  { %329 = vmatpush.msra.mxu2 %v1622_v23  ;;  %396 = vmatpush.msra.mxu3 %v1599_v15  ;;  %v244_v60 = vsub.f32 %v1643_v32, %v243_v44  ;;  %v233_v62 = vand.u32 4294901760, %v232_v50  ;;  %v255_v63 = vand.u32 4294901760, %v1697_v54  ;;  %v1722_v0 = vsub.f32 %v129_v40, %v1693_v52 }
   0xe   :  { %216 = vmatpush.msra.mxu1 %v215_v41  ;;  %149 = vmatpush.msra.mxu0 %v1599_v15  ;;  %v1724_v1 = vand.u32 4294901760, %v127_v55  ;;  %v250_v2 = vsub.f32 %v1659_v38, %v249_v53  ;;  %v239_v5 = vand.u32 4294901760, %v238_v57  ;;  %v261_v6 = vand.u32 4294901760, %v1709_v58 }
   0xf   :  { %332 = vmatpush.msra.mxu2 %v1628_v25  ;;  %398 = vmatpush.msra.mxu3 %v1602_v16  ;;  %v1737_v7 = vsub.f32 %v128_v46, %v1711_v59  ;;  %v1739_v11 = vand.u32 4294901760, %v126_v61  ;;  %v245_v12 = vand.u32 4294901760, %v244_v60  ;;  %v256_v19 = vsub.f32 %v1697_v54, %v255_v63 }
  0x10   :  { %222 = vmatpush.msra.mxu1 %v221_v49  ;;  %151 = vmatpush.msra.mxu0 %v1602_v16  ;;  %v267_v20 = vand.u32 4294901760, %v1722_v0  ;;  %v1759_v31 = vsub.f32 %v127_v55, %v1724_v1  ;;  %v1761_v33 = vand.u32 4294901760, %v125_v3  ;;  %v251_v34 = vand.u32 4294901760, %v250_v2 }
  0x11   :  { %335 = vmatpush.msra.mxu2 %v1636_v30  ;;  %400 = vmatpush.msra.mxu3 %v1604_v17  ;;  %v262_v36 = vsub.f32 %v1709_v58, %v261_v6  ;;  %v273_v37 = vand.u32 4294901760, %v1737_v7  ;;  %v1771_v39 = vsub.f32 %v126_v61, %v1739_v11  ;;  %v257_v40 = vand.u32 4294901760, %v256_v19 }
  0x12   :  { %1098 = vperm.xlu1 %1478, %v1087_v47   ;;  %1095 = vperm.xlu0 %1477, %v1086_v48   ;;  %v268_v41 = vsub.f32 %v1722_v0, %v267_v20  ;;  %v279_v42 = vand.u32 4294901760, %v1759_v31  ;;  %v1781_v46 = vsub.f32 %v125_v3, %v1761_v33  ;;  %v1517_v14 = vmov 0.0  }
  0x13   :  { %228 = vmatpush.msra.mxu1 %v227_v56  ;;  %338 = vmatpush.msra.mxu2 %v1643_v32  ;;  %v263_v47 = vand.u32 4294901760, %v262_v36  ;;  %v274_v48 = vsub.f32 %v1737_v7, %v273_v37  ;;  %v285_v49 = vand.u32 4294901760, %v1771_v39 }
  0x14   :  { %402 = vmatpush.msra.mxu3 %v1630_v26  ;;  %153 = vmatpush.msra.mxu0 %v1604_v17  ;;  %v269_v50 = vand.u32 4294901760, %v268_v41  ;;  %v280_v55 = vsub.f32 %v1759_v31, %v279_v42  ;;  %v291_v56 = vand.u32 4294901760, %v1781_v46 }
  0x15   :  { %234 = vmatpush.msra.mxu1 %v233_v62  ;;  %341 = vmatpush.msra.mxu2 %v1659_v38  ;;  %v275_v57 = vand.u32 4294901760, %v274_v48  ;;  %v286_v60 = vsub.f32 %v1771_v39, %v285_v49 }
  0x16   :  { %404 = vmatpush.msra.mxu3 %v1675_v45  ;;  %155 = vmatpush.msra.mxu0 %v1630_v26  ;;  %v281_v61 = vand.u32 4294901760, %v280_v55  ;;  %v292_v62 = vsub.f32 %v1781_v46, %v291_v56  ;;  %v584_v55 = vld [vmem:[%s2594_s4 + $0x50] sm:$0xff] }
  0x17   :  { %240 = vmatpush.msra.mxu1 %v239_v5  ;;  %344 = vmatpush.msra.mxu2 %v1697_v54  ;;  %v287_v2 = vand.u32 4294901760, %v286_v60  ;;  %v124_v5 = vld [vmem:[%s2591_s3] sm:$0xff] }
  0x18   :  { %406 = vmatpush.msra.mxu3 %v1691_v51  ;;  %157 = vmatpush.msra.mxu0 %v1675_v45  ;;  %v293_v3 = vand.u32 4294901760, %v292_v62 }
  0x19   :  { %246 = vmatpush.msra.mxu1 %v245_v12  ;;  %347 = vmatpush.msra.mxu2 %v1709_v58  ;;  %v170_v12 = vand.u32 4294901760, %v124_v5  ;;  %v589_v58 = vld [vmem:[%s2594_s4 + $0x78] sm:$0xff] }
  0x1a   :  { %1133 = vperm.xlu1 %1478, %v1746_v13   ;;  %1130 = vperm.xlu0 %1477, %v1751_v18  }
  0x1b   :  { %252 = vmatpush.msra.mxu1 %v251_v34  ;;  %350 = vmatpush.msra.mxu2 %v1722_v0  ;;  %v296_v19 = vsub.f32 %v124_v5, %v170_v12 }
  0x1c   :  { %408 = vmatpush.msra.mxu3 %v1693_v52  ;;  %159 = vmatpush.msra.mxu0 %v1691_v51 }
  0x1d   :  { %258 = vmatpush.msra.mxu1 %v257_v40  ;;  %353 = vmatpush.msra.mxu2 %v1737_v7  ;;  %v297_v34 = vand.u32 4294901760, %v296_v19 }
  0x1e   :  { %410 = vmatpush.msra.mxu3 %v1711_v59  ;;  %161 = vmatpush.msra.mxu0 %v1693_v52 }
  0x1f   :  { %264 = vmatpush.msra.mxu1 %v263_v47  ;;  %356 = vmatpush.msra.mxu2 %v1759_v31  ;;  %v298_v36 = vsub.f32 %v296_v19, %v297_v34  ;;  %v586_v31 = vld [vmem:[%s2594_s4 + $0x60] sm:$0xff] }
  0x20   :  { %412 = vmatpush.msra.mxu3 %v1724_v1  ;;  %163 = vmatpush.msra.mxu0 %v1711_v59  ;;  %v1939_v41 = vand.u32 4294901760, %v586_v31 }
  0x21   :  { %270 = vmatpush.msra.mxu1 %v269_v50  ;;  %359 = vmatpush.msra.mxu2 %v1771_v39  ;;  %v299_v40 = vand.u32 4294901760, %v298_v36  ;;  %v582_v36 = vld [vmem:[%s2594_s4 + $0x40] sm:$0xff] }
  0x22   :  { %414 = vmatpush.msra.mxu3 %v1739_v11  ;;  %165 = vmatpush.msra.mxu0 %v1724_v1 }
  0x23   :  { %276 = vmatpush.msra.mxu1 %v275_v57  ;;  %362 = vmatpush.msra.mxu2 %v1781_v46 }
  0x24   :  { %416 = vmatpush.msra.mxu3 %v1761_v33  ;;  %167 = vmatpush.msra.mxu0 %v1739_v11 }
  0x25   :  { %282 = vmatpush.msra.mxu1 %v281_v61  ;;  %365 = vmatpush.msra.mxu2 %v296_v19  ;;  %v1966_v61 = vand.u32 4294901760, %v584_v55 }
  0x26   :  { %169 = vmatpush.msra.mxu0 %v1761_v33  ;;  %418 = vmatpush.msra.mxu3 %v170_v12 }
  0x27   :  { %288 = vmatpush.msra.mxu1 %v287_v2  ;;  %v583_v2 = vld [vmem:[%s2594_s4 + $0x48] sm:$0xff] }
  0x28   :  { %171 = vmatpush.msra.mxu0 %v170_v12  ;;  %v1982_v19 = vand.u32 4294901760, %v583_v2 }
  0x29   :  { %294 = vmatpush.msra.mxu1 %v293_v3 }
  0x2a   :  { %447 = vmatpush.msrb.mxu0 %v207_v24 }
  0x2b   :  { %300 = vmatpush.msra.mxu1 %v299_v40 }
  0x2c   :  { %451 = vmatpush.msrb.mxu0 %v213_v27 }
  0x2d   :  { %526 = vmatpush.msrb.mxu1 %v1569_v4  ;;  %v94_v4 = vlaneseq }
  0x2e   :  { %455 = vmatpush.msrb.mxu0 %v219_v28 }
  0x2f   :  { %528 = vmatpush.msrb.mxu1 %v1580_v8  ;;  %v1858_v8 = vand.u32 127, %v94_v4 }
  0x30   :  { %459 = vmatpush.msrb.mxu0 %v225_v29 }
  0x31   :  { %530 = vmatpush.msrb.mxu1 %v1582_v9 }
  0x32   :  { %463 = vmatpush.msrb.mxu0 %v231_v35 }
  0x33   :  { %532 = vmatpush.msrb.mxu1 %v1584_v10  ;;  %v1516_v10 = vmov 1.0  }
  0x34   :  { %467 = vmatpush.msrb.mxu0 %v237_v43 }
  0x35   :  { %534 = vmatpush.msrb.mxu1 %v1599_v15 }
  0x36   :  { %471 = vmatpush.msrb.mxu0 %v243_v44 }
  0x37   :  { %536 = vmatpush.msrb.mxu1 %v1602_v16 }
  0x38   :  { %475 = vmatpush.msrb.mxu0 %v249_v53 }
  0x39   :  { %538 = vmatpush.msrb.mxu1 %v1604_v17 }
  0x3a   :  { %479 = vmatpush.msrb.mxu0 %v255_v63  ;;  %v588_v63 = vld [vmem:[%s2594_s4 + $0x70] sm:$0xff] }
  0x3b   :  { %540 = vmatpush.msrb.mxu1 %v1630_v26 }
  0x3c   :  { %483 = vmatpush.msrb.mxu0 %v261_v6  ;;  %v587_v6 = vld [vmem:[%s2594_s4 + $0x68] sm:$0xff] }
  0x3d   :  { %542 = vmatpush.msrb.mxu1 %v1675_v45 }
  0x3e   :  { %487 = vmatpush.msrb.mxu0 %v267_v20  ;;  %v1924_v20 = vand.u32 4294901760, %v587_v6 }
  0x3f   :  { %544 = vmatpush.msrb.mxu1 %v1691_v51 }
  0x40   :  { %491 = vmatpush.msrb.mxu0 %v273_v37  ;;  %v1936_v39 = vsub.f32 %v587_v6, %v1924_v20  ;;  %v577_v6 = vld [vmem:[%s2594_s4 + $0x18] sm:$0xff] }
  0x41   :  { %546 = vmatpush.msrb.mxu1 %v1693_v52 }
  0x42   :  { %495 = vmatpush.msrb.mxu0 %v279_v42  ;;  %v585_v42 = vld [vmem:[%s2594_s4 + $0x58] sm:$0xff]  ;;  %v669_v48 = vand.u32 4294901760, %v1936_v39 }
  0x43   :  { %548 = vmatpush.msrb.mxu1 %v1711_v59  ;;  %v1904_v59 = vand.u32 4294901760, %v589_v58  ;;  %v1955_v50 = vand.u32 4294901760, %v585_v42 }
  0x44   :  { %499 = vmatpush.msrb.mxu0 %v285_v49  ;;  %v1951_v49 = vsub.f32 %v586_v31, %v1939_v41  ;;  %v670_v57 = vsub.f32 %v1936_v39, %v669_v48 }
  0x45   :  { %550 = vmatpush.msrb.mxu1 %v1724_v1  ;;  %v1910_v0 = vsub.f32 %v589_v58, %v1904_v59  ;;  %v1912_v1 = vand.u32 4294901760, %v588_v63  ;;  %591 = vmatpush.msrb.mxu2 %v1904_v59  ;;  %v1969_v62 = vsub.f32 %v585_v42, %v1955_v50 }
  0x46   :  { %503 = vmatpush.msrb.mxu0 %v291_v56  ;;  %v675_v60 = vand.u32 4294901760, %v1951_v49  ;;  %v671_v3 = vand.u32 4294901760, %v670_v57 }
  0x47   :  { %552 = vmatpush.msrb.mxu1 %v1739_v11  ;;  %v657_v7 = vand.u32 4294901760, %v1910_v0  ;;  %v1921_v11 = vsub.f32 %v588_v63, %v1912_v1  ;;  %593 = vmatpush.msrb.mxu2 %v1912_v1 }
  0x48   :  { %507 = vmatpush.msrb.mxu0 %v297_v34  ;;  %v676_v5 = vsub.f32 %v1951_v49, %v675_v60  ;;  %v681_v34 = vand.u32 4294901760, %v1969_v62 }
  0x49   :  { %554 = vmatpush.msrb.mxu1 %v1761_v33  ;;  %v658_v33 = vsub.f32 %v1910_v0, %v657_v7  ;;  %v663_v37 = vand.u32 4294901760, %v1921_v11  ;;  %595 = vmatpush.msrb.mxu2 %v1924_v20 }
  0x4a   :  { %v677_v40 = vand.u32 4294901760, %v676_v5 }
  0x4b   :  { %556 = vmatpush.msrb.mxu1 %v170_v12  ;;  %v659_v46 = vand.u32 4294901760, %v658_v33  ;;  %v664_v47 = vsub.f32 %v1921_v11, %v663_v37  ;;  %597 = vmatpush.msrb.mxu2 %v1939_v41  ;;  %v1980_v12 = vsub.f32 %v584_v55, %v1966_v61 }
  0x4d   :  { %660 = vmatpush.msrb.mxu3 %v659_v46  ;;  %v665_v56 = vand.u32 4294901760, %v664_v47  ;;  %599 = vmatpush.msrb.mxu2 %v1955_v50  ;;  %v687_v4 = vand.u32 4294901760, %v1980_v12  ;;  %v2068_v46 = vand.u32 4294901760, %v577_v6 }
  0x4f   :  { %666 = vmatpush.msrb.mxu3 %v665_v56  ;;  %601 = vmatpush.msrb.mxu2 %v1966_v61  ;;  %v576_v56 = vld [vmem:[%s2594_s4 + $0x10] sm:$0xff] }
  0x50   :  { %v2088_v5 = vand.u32 4294901760, %v576_v56 }
  0x51   :  { %672 = vmatpush.msrb.mxu3 %v671_v3  ;;  %603 = vmatpush.msrb.mxu2 %v1982_v19  ;;  %v2086_v3 = vsub.f32 %v577_v6, %v2068_v46 }
  0x53   :  { %678 = vmatpush.msrb.mxu3 %v677_v40  ;;  %v575_v40 = vld [vmem:[%s2594_s4 + $0x8] sm:$0xff] }
  0x74   :  { %v102_v9 = vpop.permute.xlu0 %101  ;;  %v108_v17 = vpop.permute.xlu1 %107 }
  0x75   :  { %vm112_vm0 = vcmp.eq.s32.totalorder %v1858_v8, %v102_v9  ;;  %vm114_vm1 = vcmp.eq.s32.totalorder %v1858_v8, %v108_v17  ;;  %v1992_v9 = vsub.f32 %v583_v2, %v1982_v19  ;;  %v688_v17 = vsub.f32 %v1980_v12, %v687_v4 }
  0x76   :  { %1415 = vmatmul.msk.f32.vlgmr.msra.gmra.mxu1 %vm112_vm0, %v1516_v10  ;;  %v1411_v15 = vsel %vm112_vm0, 1.0, %v1517_v14  ;;  %v1413_v26 = vsel %vm114_vm1, 1.0, %v1517_v14 }
  0x77   :  { %v173_v16 = vsub.f32 %v1411_v15, %v1411_v15  ;;  %v189_v29 = vsub.f32 %v1413_v26, %v1413_v26  ;;  %838 = vmatpush.msra.mxu1 %v1904_v59  ;;  %v682_v15 = vsub.f32 %v1969_v62, %v681_v34  ;;  %v689_v26 = vand.u32 4294901760, %v688_v17 }
  0x78   :  { %v729_v17 = vand.u32 4294901760, %v2086_v3 }
  0x79   :  { %368 = vmatmul.f32.vlgmr.msra.gmra.mxu2 %v173_v16  ;;  %v174_v21 = vand.u32 4294901760, %v173_v16  ;;  %v190_v38 = vand.u32 4294901760, %v189_v29  ;;  %840 = vmatpush.msra.mxu1 %v1912_v1 }
  0x7b   :  { %422 = vmatmul.f32.vlgmr.msra.gmra.mxu3 %v174_v21  ;;  %v175_v22 = vsub.f32 %v173_v16, %v174_v21  ;;  %v191_v44 = vsub.f32 %v189_v29, %v190_v38  ;;  %842 = vmatpush.msra.mxu1 %v1924_v20  ;;  %v581_v16 = vld [vmem:[%s2594_s4 + $0x38] sm:$0xff]  ;;  %v693_v21 = vand.u32 4294901760, %v1992_v9 }
  0x7c   :  { %v105_v23 = vpop.permute.xlu0 %104  ;;  %v111_v30 = vpop.permute.xlu1 %110 }
  0x7d   :  { %vm113_vm2 = vcmp.eq.s32.totalorder %v1858_v8, %v105_v23  ;;  %v176_v24 = vand.u32 4294901760, %v175_v22  ;;  %vm115_vm3 = vcmp.eq.s32.totalorder %v1858_v8, %v111_v30  ;;  %v192_v51 = vand.u32 4294901760, %v191_v44  ;;  %844 = vmatpush.msra.mxu1 %v1939_v41 }
  0x7e   :  { %1416 = vmatmul.msk.f32.gmra.mxu1 %vm113_vm2, %v1516_v10  ;;  %v1412_v25 = vsel %vm113_vm2, 1.0, %v1517_v14  ;;  %v1414_v43 = vsel %vm115_vm3, 1.0, %v1517_v14  ;;  %v2012_v23 = vand.u32 4294901760, %v581_v16 }
  0x7f   :  { %177 = vmatmul.f32.vlgmr.msra.gmra.mxu0 %v176_v24  ;;  %v181_v27 = vsub.f32 %v1412_v25, %v1412_v25  ;;  %v197_v45 = vsub.f32 %v1414_v43, %v1414_v43  ;;  %846 = vmatpush.msra.mxu1 %v1955_v50  ;;  %v683_v24 = vand.u32 4294901760, %v682_v15  ;;  %v580_v25 = vld [vmem:[%s2594_s4 + $0x30] sm:$0xff] }
  0x80   :  { %770 = vmatpush.msra.mxu0 %v1910_v0  ;;  %v2029_v30 = vand.u32 4294901760, %v580_v25  ;;  %v1084_v0 = vld [vmem:[%s2592_s1] sm:$0xff] }
  0x81   :  { %373 = vmatmul.f32.gmra.mxu2 %v181_v27  ;;  %v182_v28 = vand.u32 4294901760, %v181_v27  ;;  %v198_v52 = vand.u32 4294901760, %v197_v45  ;;  %848 = vmatpush.msra.mxu1 %v1966_v61 }
  0x82   :  { %773 = vmatpush.msra.mxu0 %v1921_v11  ;;  %684 = vmatpush.msrb.mxu3 %v683_v24  ;;  %v2101_v24 = vsub.f32 %v576_v56, %v2088_v5 }
  0x83   :  { %428 = vmatmul.f32.gmra.mxu3 %v182_v28  ;;  %v183_v32 = vsub.f32 %v181_v27, %v182_v28  ;;  %v199_v53 = vsub.f32 %v197_v45, %v198_v52  ;;  %850 = vmatpush.msra.mxu1 %v1982_v19  ;;  %v694_v27 = vsub.f32 %v1992_v9, %v693_v21 }
  0x84   :  { %776 = vmatpush.msra.mxu0 %v1936_v39  ;;  %690 = vmatpush.msrb.mxu3 %v689_v26  ;;  %v574_v26 = vld [vmem:[%s2594_s4] sm:$0xff]  ;;  %v2190_v39 = vld [vmem:[%s2593_s2 + $0x18] sm:$0xff] }
  0x85   :  { %v184_v35 = vand.u32 4294901760, %v183_v32  ;;  %v200_v54 = vand.u32 4294901760, %v199_v53  ;;  %v579_v32 = vld [vmem:[%s2594_s4 + $0x28] sm:$0xff]  ;;  %1089 = vperm.xlu2 %1479, %v1084_v0  }
  0x86   :  { %1417 = vmatmul.msk.f32.gmra.mxu1 %vm114_vm1, %v1516_v10  ;;  %779 = vmatpush.msra.mxu0 %v1951_v49  ;;  %v2038_v44 = vand.u32 4294901760, %v579_v32  ;;  %v2199_v49 = vld [vmem:[%s2593_s2] sm:$0xff] }
  0x87   :  { %185 = vmatmul.f32.gmra.mxu0 %v184_v35  ;;  %v695_v35 = vand.u32 4294901760, %v694_v27 }
  0x88   :  { %782 = vmatpush.msra.mxu0 %v1969_v62 }
  0x89   :  { %378 = vmatmul.f32.gmra.mxu2 %v189_v29  ;;  %v2025_v29 = vsub.f32 %v581_v16, %v2012_v23  ;;  %696 = vmatpush.msrb.mxu3 %v695_v35  ;;  %v735_v35 = vand.u32 4294901760, %v2101_v24 }
  0x8a   :  { %785 = vmatpush.msra.mxu0 %v1980_v12 }
  0x8b   :  { %434 = vmatmul.f32.gmra.mxu3 %v190_v38  ;;  %v705_v43 = vand.u32 4294901760, %v2025_v29 }
  0x8c   :  { %788 = vmatpush.msra.mxu0 %v1992_v9 }
  0x8d   :  { %v706_v53 = vsub.f32 %v2025_v29, %v705_v43 }
  0x8e   :  { %1418 = vmatmul.msk.f32.gmra.mxu1 %vm115_vm3, %v1516_v10 }
  0x8f   :  { %193 = vmatmul.f32.gmra.mxu0 %v192_v51  ;;  %v578_v51 = vld [vmem:[%s2594_s4 + $0x20] sm:$0xff]  ;;  %v707_v31 = vand.u32 4294901760, %v706_v53  ;;  %v736_v53 = vsub.f32 %v2101_v24, %v735_v35 }
  0x90   :  { %v2055_v58 = vand.u32 4294901760, %v578_v51 }
  0x91   :  { %383 = vmatmul.f32.gmra.mxu2 %v197_v45  ;;  %v2043_v45 = vsub.f32 %v580_v25, %v2029_v30  ;;  %v2106_v25 = vand.u32 4294901760, %v575_v40 }
  0x92   :  { %v2066_v42 = vsub.f32 %v578_v51, %v2055_v58 }
  0x93   :  { %440 = vmatmul.f32.gmra.mxu3 %v198_v52  ;;  %v711_v63 = vand.u32 4294901760, %v2043_v45  ;;  %v2120_v51 = vsub.f32 %v575_v40, %v2106_v25 }
  0x94   :  { %v723_v2 = vand.u32 4294901760, %v2066_v42 }
  0x95   :  { %v712_v55 = vsub.f32 %v2043_v45, %v711_v63 }
  0x96   :  { %1423 = vmatmul.msk.f32.vlgmr.msrb.gmra.mxu1 %vm112_vm0, %v1516_v10  ;;  %v724_v16 = vsub.f32 %v2066_v42, %v723_v2 }
  0x97   :  { %201 = vmatmul.f32.gmra.mxu0 %v200_v54  ;;  %v2053_v54 = vsub.f32 %v579_v32, %v2038_v44  ;;  %v730_v32 = vsub.f32 %v2086_v3, %v729_v17 }
  0x98   :  { %v725_v27 = vand.u32 4294901760, %v724_v16 }
  0x99   :  { %v717_v33 = vand.u32 4294901760, %v2053_v54 }
  0x9b   :  { %v718_v57 = vsub.f32 %v2053_v54, %v717_v33 }
  0x9d   :  { %v719_v15 = vand.u32 4294901760, %v718_v57  ;;  %v737_v57 = vand.u32 4294901760, %v736_v53 }
  0x9e   :  { %1424 = vmatmul.msk.f32.gmra.mxu1 %vm113_vm2, %v1516_v10 }
  0x9f   :  { %1419 = vmatmul.msk.f32.vlgmr.msrb.gmra.mxu0 %vm112_vm0, %v1516_v10 }
  0xa6   :  { %1425 = vmatmul.msk.f32.gmra.mxu1 %vm114_vm1, %v1516_v10 }
  0xa7   :  { %1420 = vmatmul.msk.f32.gmra.mxu0 %vm113_vm2, %v1516_v10 }
  0xae   :  { %1426 = vmatmul.msk.f32.gmra.mxu1 %vm115_vm3, %v1516_v10 }
  0xaf   :  { %1421 = vmatmul.msk.f32.gmra.mxu0 %vm114_vm1, %v1516_v10 }
  0xb7   :  { %1422 = vmatmul.msk.f32.gmra.mxu0 %vm115_vm3, %v1516_v10  ;;  %v1994_v10 = vand.u32 4294901760, %v582_v36 }
  0xb9   :  { %v2010_v22 = vsub.f32 %v582_v36, %v1994_v10  ;;  %852 = vmatpush.msra.mxu1 %v1994_v10  ;;  %605 = vmatpush.msrb.mxu2 %v1994_v10  ;;  %v713_v36 = vand.u32 4294901760, %v712_v55  ;;  %v741_v55 = vand.u32 4294901760, %v2120_v51 }
  0xbb   :  { %v699_v28 = vand.u32 4294901760, %v2010_v22  ;;  %791 = vmatpush.msra.mxu0 %v2010_v22  ;;  %854 = vmatpush.msra.mxu1 %v2012_v23  ;;  %v742_v40 = vsub.f32 %v2120_v51, %v741_v55 }
  0xbc   :  { %607 = vmatpush.msrb.mxu2 %v2012_v23 }
  0xbd   :  { %v700_v38 = vsub.f32 %v2010_v22, %v699_v28  ;;  %794 = vmatpush.msra.mxu0 %v2025_v29  ;;  %856 = vmatpush.msra.mxu1 %v2029_v30  ;;  %v743_v16 = vand.u32 4294901760, %v742_v40 }
  0xbe   :  { %609 = vmatpush.msrb.mxu2 %v2029_v30 }
  0xbf   :  { %v701_v52 = vand.u32 4294901760, %v700_v38  ;;  %797 = vmatpush.msra.mxu0 %v2043_v45  ;;  %858 = vmatpush.msra.mxu1 %v2038_v44  ;;  %v2115_v38 = vand.u32 4294901760, %v574_v26 }
  0xc0   :  { %611 = vmatpush.msrb.mxu2 %v2038_v44 }
  0xc1   :  { %702 = vmatpush.msrb.mxu3 %v701_v52  ;;  %800 = vmatpush.msra.mxu0 %v2053_v54  ;;  %v731_v52 = vand.u32 4294901760, %v730_v32  ;;  %v2127_v6 = vsub.f32 %v574_v26, %v2115_v38 }
  0xc2   :  { %860 = vmatpush.msra.mxu1 %v2055_v58  ;;  %613 = vmatpush.msrb.mxu2 %v2055_v58 }
  0xc3   :  { %708 = vmatpush.msrb.mxu3 %v707_v31  ;;  %803 = vmatpush.msra.mxu0 %v2066_v42 }
  0xc4   :  { %862 = vmatpush.msra.mxu1 %v2068_v46  ;;  %615 = vmatpush.msrb.mxu2 %v2068_v46 }
  0xc5   :  { %714 = vmatpush.msrb.mxu3 %v713_v36  ;;  %806 = vmatpush.msra.mxu0 %v2086_v3  ;;  %v747_v36 = vand.u32 4294901760, %v2127_v6 }
  0xc6   :  { %864 = vmatpush.msra.mxu1 %v2088_v5  ;;  %617 = vmatpush.msrb.mxu2 %v2088_v5 }
  0xc7   :  { %720 = vmatpush.msrb.mxu3 %v719_v15  ;;  %809 = vmatpush.msra.mxu0 %v2101_v24  ;;  %v748_v15 = vsub.f32 %v2127_v6, %v747_v36 }
  0xc8   :  { %866 = vmatpush.msra.mxu1 %v2106_v25  ;;  %619 = vmatpush.msrb.mxu2 %v2106_v25 }
  0xc9   :  { %726 = vmatpush.msrb.mxu3 %v725_v27  ;;  %812 = vmatpush.msra.mxu0 %v2120_v51  ;;  %v749_v26 = vand.u32 4294901760, %v748_v15  ;;  %v1521_v15 = vmov 4  }
  0xca   :  { %868 = vmatpush.msra.mxu1 %v2115_v38  ;;  %621 = vmatpush.msrb.mxu2 %v2115_v38 }
  0xcb   :  { %732 = vmatpush.msrb.mxu3 %v731_v52  ;;  %815 = vmatpush.msra.mxu0 %v2127_v6 }
  0xcc   :  { %897 = vmatpush.msra.mxu2 %v657_v7 }
  0xcd   :  { %738 = vmatpush.msrb.mxu3 %v737_v57 }
  0xce   :  { %901 = vmatpush.msra.mxu2 %v663_v37 }
  0xcf   :  { %744 = vmatpush.msrb.mxu3 %v743_v16 }
  0xd0   :  { %905 = vmatpush.msra.mxu2 %v669_v48 }
  0xd1   :  { %750 = vmatpush.msrb.mxu3 %v749_v26 }
  0xd2   :  { %909 = vmatpush.msra.mxu2 %v675_v60 }
  0xd3   :  { %976 = vmatpush.msra.mxu3 %v1904_v59  ;;  %v1518_v59 = vmov 1  }
  0xd4   :  { %913 = vmatpush.msra.mxu2 %v681_v34  ;;  %1481 = vset.pattern.permute.xlu1 %v1518_v59  ;;  %v1519_v34 = vmov 2  }
  0xd5   :  { %978 = vmatpush.msra.mxu3 %v1912_v1  ;;  %1161 = vperm.xlu1 %1481, %v1751_v18   ;;  %v1085_v1 = vld [vmem:[%s2592_s1 + $0x8] sm:$0xff] }
  0xd6   :  { %917 = vmatpush.msra.mxu2 %v687_v4  ;;  %1480 = vset.pattern.permute.xlu0 %v1518_v59 }
  0xd7   :  { %980 = vmatpush.msra.mxu3 %v1924_v20  ;;  %1092 = vperm.xlu2 %1479, %v1085_v1  }
  0xd8   :  { %921 = vmatpush.msra.mxu2 %v693_v21  ;;  %1158 = vperm.xlu0 %1480, %v2199_v49  }
  0xd9   :  { %982 = vmatpush.msra.mxu3 %v1939_v41 }
  0xda   :  { %925 = vmatpush.msra.mxu2 %v699_v28 }
  0xdb   :  { %984 = vmatpush.msra.mxu3 %v1955_v50 }
  0xdc   :  { %929 = vmatpush.msra.mxu2 %v705_v43 }
  0xdd   :  { %986 = vmatpush.msra.mxu3 %v1966_v61  ;;  %1167 = vperm.xlu1 %1481, %v2190_v39  }
  0xde   :  { %933 = vmatpush.msra.mxu2 %v711_v63 }
  0xdf   :  { %988 = vmatpush.msra.mxu3 %v1982_v19  ;;  %1127 = vperm.xlu2 %1479, %v2199_v49  }
  0xe0   :  { %937 = vmatpush.msra.mxu2 %v717_v33  ;;  %1484 = vset.pattern.permute.xlu0 %v1519_v34 }
  0xe1   :  { %990 = vmatpush.msra.mxu3 %v1994_v10  ;;  %1193 = vperm.xlu0 %1484, %v1751_v18  }
  0xe2   :  { %941 = vmatpush.msra.mxu2 %v723_v2 }
  0xe3   :  { %992 = vmatpush.msra.mxu3 %v2012_v23 }
  0xe4   :  { %945 = vmatpush.msra.mxu2 %v729_v17 }
  0xe5   :  { %994 = vmatpush.msra.mxu3 %v2029_v30  ;;  %1485 = vset.pattern.permute.xlu1 %v1519_v34 }
  0xe6   :  { %949 = vmatpush.msra.mxu2 %v735_v35  ;;  %1196 = vperm.xlu1 %1485, %v1746_v13  }
  0xe7   :  { %996 = vmatpush.msra.mxu3 %v2038_v44  ;;  %1136 = vperm.xlu2 %1479, %v2190_v39  }
  0xe8   :  { %953 = vmatpush.msra.mxu2 %v741_v55 }
  0xe9   :  { %998 = vmatpush.msra.mxu3 %v2055_v58  ;;  %v1520_v58 = vmov 3  }
  0xea   :  { %957 = vmatpush.msra.mxu2 %v747_v36  ;;  %1488 = vset.pattern.permute.xlu0 %v1520_v58 }
  0xeb   :  { %1000 = vmatpush.msra.mxu3 %v2068_v46  ;;  %1228 = vperm.xlu0 %1488, %v1746_v13  }
  0xed   :  { %1002 = vmatpush.msra.mxu3 %v2088_v5 }
  0xee   :  { %1486 = vset.pattern.permute.xlu1 %v1520_v58 }
  0xef   :  { %1004 = vmatpush.msra.mxu3 %v2106_v25  ;;  %1222 = vperm.xlu1 %1486, %v2199_v49  }
  0xf0   :  { %1482 = vset.pattern.permute.xlu2 %v1518_v59 }
  0xf1   :  { %1006 = vmatpush.msra.mxu3 %v2115_v38  ;;  %1164 = vperm.xlu2 %1482, %v1746_v13  }
  0xf3   :  { %v2072_v47 = vpop.f32.mrf.mxu1  ;;  %1491 = vset.pattern.permute.xlu0 %v1521_v15 }
  0xf4   :  { %1263 = vperm.xlu0 %1491, %v2190_v39  }
  0xf7   :  { %1231 = vperm.xlu1 %1486, %v2190_v39  }
  0xf9   :  { %1483 = vset.pattern.permute.xlu2 %v1519_v34 }
  0xfa   :  { %1190 = vperm.xlu2 %1483, %v2199_v49  }
  0xfb   :  { %v2131_v31 = vpop.f32.mrf.mxu1 }
  0xfc   :  { %v178_v56 = vpop.f32.mrf.mxu0  ;;  %v369_v20 = vpop.f32.mrf.mxu2 }
  0xfd   :  { %v304_v37 = vadd.f32 %v2072_v47, %v178_v56 }
  0xfe   :  { %v423_v41 = vpop.f32.mrf.mxu3 }
  0xff   :  { %v370_v50 = vadd.f32 %v369_v20, %v304_v37  ;;  %1490 = vset.pattern.permute.xlu1 %v1521_v15  ;;  %v1522_v37 = vmov 5  }
 0x100   :  { %1257 = vperm.xlu1 %1490, %v1751_v18  }
 0x101   :  { %v424_v62 = vadd.f32 %v423_v41, %v370_v50  ;;  %v1524_v50 = vmov 7  }
 0x102   :  { %1199 = vperm.xlu2 %1483, %v2190_v39  }
 0x103   :  { %v2151_v27 = vpop.f32.mrf.mxu1 }
 0x104   :  { %v186_v32 = vpop.f32.mrf.mxu0  ;;  %v374_v61 = vpop.f32.mrf.mxu2 }
 0x105   :  { %v308_v12 = vadd.f32 %v2131_v31, %v186_v32 }
 0x106   :  { %v429_v9 = vpop.f32.mrf.mxu3 }
 0x107   :  { %v375_v10 = vadd.f32 %v374_v61, %v308_v12 }
 0x108   :  { %1492 = vset.pattern.permute.xlu1 %v1522_v37 }
 0x109   :  { %v430_v28 = vadd.f32 %v429_v9, %v375_v10  ;;  %1286 = vperm.xlu1 %1492, %v2199_v49  }
 0x10a   :  { %1487 = vset.pattern.permute.xlu2 %v1520_v58 }
 0x10b   :  { %v2177_v11 = vpop.f32.mrf.mxu1  ;;  %1225 = vperm.xlu2 %1487, %v1751_v18  }
 0x10c   :  { %v194_v7 = vpop.f32.mrf.mxu0  ;;  %v379_v43 = vpop.f32.mrf.mxu2 }
 0x10d   :  { %v312_v29 = vadd.f32 %v2151_v27, %v194_v7 }
 0x10e   :  { %v435_v46 = vpop.f32.mrf.mxu3 }
 0x10f   :  { %v380_v63 = vadd.f32 %v379_v43, %v312_v29 }
 0x111   :  { %v436_v3 = vadd.f32 %v435_v46, %v380_v63  ;;  %1292 = vperm.xlu1 %1492, %v1746_v13  }
 0x113   :  { %v559_v60 = vpop.f32.mrf.mxu1  ;;  %1489 = vset.pattern.permute.xlu2 %v1521_v15 }
 0x114   :  { %v202_v48 = vpop.f32.mrf.mxu0  ;;  %v384_v51 = vpop.f32.mrf.mxu2  ;;  %1254 = vperm.xlu2 %1489, %v2199_v49  }
 0x115   :  { %v316_v5 = vadd.f32 %v2177_v11, %v202_v48  ;;  %v1523_v48 = vmov 6  }
 0x116   :  { %v441_v56 = vpop.f32.mrf.mxu3  ;;  %1495 = vset.pattern.permute.xlu0 %v1523_v48 }
 0x117   :  { %v385_v52 = vadd.f32 %v384_v51, %v316_v5  ;;  %1321 = vperm.xlu0 %1495, %v1751_v18  }
 0x119   :  { %v442_v57 = vadd.f32 %v441_v56, %v385_v52  ;;  %1295 = vperm.xlu1 %1492, %v2190_v39  }
 0x11b   :  { %v563_v23 = vpop.f32.mrf.mxu1 }
 0x11c   :  { %v510_v19 = vpop.f32.mrf.mxu0  ;;  %1260 = vperm.xlu2 %1489, %v1746_v13  }
 0x11d   :  { %v511_v4 = vadd.f32 %v510_v19, %v424_v62  ;;  %v2269_v62 = vpop.permute.xlu1 %1098 }
 0x11e   :  { %vm1103_vm4 = vcmp.eq.s32.totalorder %v1858_v8, %v2269_v62 }
 0x11f   :  { %v560_v21 = vadd.f32 %v559_v60, %v511_v4  ;;  %1327 = vperm.xlu0 %1495, %v2190_v39   ;;  %v2264_v60 = vpop.permute.xlu2 %1089 }
 0x120   :  { %vm1100_vm8 = vcmp.eq.s32.totalorder %v1858_v8, %v2264_v60 }
 0x121   :  { %v2223_v22 = vand.u32 4294901760, %v560_v21  ;;  %1496 = vset.pattern.permute.xlu1 %v1524_v50 }
 0x122   :  { %1350 = vperm.xlu1 %1496, %v2199_v49  }
 0x123   :  { %v623_v30 = vsub.f32 %v560_v21, %v2223_v22  ;;  %752 = vmatmul.f32.vlgmr.msrb.gmra.mxu3 %v2223_v22  ;;  %v567_v24 = vpop.f32.mrf.mxu1 }
 0x124   :  { %v514_v44 = vpop.f32.mrf.mxu0  ;;  %1493 = vset.pattern.permute.xlu2 %v1522_v37 }
 0x125   :  { %v515_v45 = vadd.f32 %v514_v44, %v430_v28  ;;  %818 = vmatmul.f32.vlgmr.msra.gmra.mxu0 %v623_v30  ;;  %v624_v54 = vand.u32 4294901760, %v623_v30  ;;  %1289 = vperm.xlu2 %1493, %v1751_v18   ;;  %v2273_v19 = vpop.permute.xlu1 %1133 }
 0x126   :  { %vm1140_vm6 = vcmp.eq.s32.totalorder %v1858_v8, %v2273_v19 }
 0x127   :  { %v564_v33 = vadd.f32 %v563_v23, %v515_v45  ;;  %872 = vmatmul.f32.vlgmr.msra.gmra.mxu1 %v624_v54  ;;  %v625_v42 = vsub.f32 %v623_v30, %v624_v54  ;;  %1498 = vset.pattern.permute.xlu0 %v1524_v50  ;;  %v2291_v30 = vpop.permute.xlu0 %1095 }
 0x128   :  { %vm1102_vm5 = vcmp.eq.s32.totalorder %v1858_v8, %v2291_v30 }
 0x129   :  { %v2234_v47 = vand.u32 4294901760, %v564_v33  ;;  %v626_v2 = vand.u32 4294901760, %v625_v42  ;;  %v2351_v30 = vsel %vm1102_vm5, 1.0, %v1517_v14 }
 0x12a   :  { %1356 = vperm.xlu1 %1496, %v1746_v13  }
 0x12b   :  { %627 = vmatmul.f32.vlgmr.msrb.gmra.mxu2 %v626_v2  ;;  %756 = vmatmul.f32.gmra.mxu3 %v2234_v47  ;;  %v631_v17 = vsub.f32 %v564_v33, %v2234_v47  ;;  %v571_v27 = vpop.f32.mrf.mxu1 }
 0x12c   :  { %v518_v25 = vpop.f32.mrf.mxu0 }
 0x12d   :  { %v519_v35 = vadd.f32 %v518_v25, %v436_v3  ;;  %823 = vmatmul.f32.gmra.mxu0 %v631_v17  ;;  %v632_v38 = vand.u32 4294901760, %v631_v17  ;;  %1494 = vset.pattern.permute.xlu2 %v1523_v48 }
 0x12e   :  { %1318 = vperm.xlu2 %1494, %v2199_v49  }
 0x12f   :  { %v568_v53 = vadd.f32 %v567_v24, %v519_v35  ;;  %878 = vmatmul.f32.gmra.mxu1 %v632_v38  ;;  %v633_v6 = vsub.f32 %v631_v17, %v632_v38  ;;  %v2297_v63 = vpop.permute.xlu0 %1130 }
 0x130   :  { %vm1139_vm7 = vcmp.eq.s32.totalorder %v1858_v8, %v2297_v63 }
 0x131   :  { %v638_v31 = vand.u32 4294901760, %v568_v53  ;;  %v634_v55 = vand.u32 4294901760, %v633_v6  ;;  %v2267_v61 = vpop.permute.xlu2 %1092 }
 0x132   :  { %vm1101_vm9 = vcmp.eq.s32.totalorder %v1858_v8, %v2267_v61 }
 0x133   :  { %635 = vmatmul.f32.gmra.mxu2 %v634_v55  ;;  %760 = vmatmul.f32.gmra.mxu3 %v638_v31  ;;  %v639_v36 = vsub.f32 %v568_v53, %v638_v31 }
 0x134   :  { %v522_v40 = vpop.f32.mrf.mxu0 }
 0x135   :  { %v523_v16 = vadd.f32 %v522_v40, %v442_v57  ;;  %828 = vmatmul.f32.gmra.mxu0 %v639_v36  ;;  %v640_v26 = vand.u32 4294901760, %v639_v36 }
 0x136   :  { %1324 = vperm.xlu2 %1494, %v1746_v13  }
 0x137   :  { %v572_v32 = vadd.f32 %v571_v27, %v523_v16  ;;  %884 = vmatmul.f32.gmra.mxu1 %v640_v26  ;;  %v641_v0 = vsub.f32 %v639_v36, %v640_v26 }
 0x139   :  { %v646_v59 = vand.u32 4294901760, %v572_v32  ;;  %v642_v7 = vand.u32 4294901760, %v641_v0  ;;  %v2271_v12 = vpop.permute.xlu2 %1127 }
 0x13a   :  { %vm1138_vm10 = vcmp.eq.s32.totalorder %v1858_v8, %v2271_v12  ;;  %v2373_v12 = vsel %vm1101_vm9, 1.0, %v1517_v14 }
 0x13b   :  { %643 = vmatmul.f32.gmra.mxu2 %v642_v7  ;;  %764 = vmatmul.f32.gmra.mxu3 %v646_v59  ;;  %v647_v1 = vsub.f32 %v572_v32, %v646_v59 }
 0x13d   :  { %833 = vmatmul.f32.gmra.mxu0 %v647_v1  ;;  %v648_v11 = vand.u32 4294901760, %v647_v1 }
 0x13e   :  { %1497 = vset.pattern.permute.xlu2 %v1524_v50 }
 0x13f   :  { %890 = vmatmul.f32.gmra.mxu1 %v648_v11  ;;  %v649_v20 = vsub.f32 %v647_v1, %v648_v11  ;;  %1353 = vperm.xlu2 %1497, %v1751_v18  }
 0x141   :  { %v650_v41 = vand.u32 4294901760, %v649_v20  ;;  %v2275_v34 = vpop.permute.xlu2 %1136 }
 0x142   :  { %vm1141_vm11 = vcmp.eq.s32.totalorder %v1858_v8, %v2275_v34 }
 0x143   :  { %651 = vmatmul.f32.gmra.mxu2 %v650_v41  ;;  %1008 = vmatmul.f32.vlgmr.msra.gmra.mxu3 %v2223_v22 }
 0x147   :  { %1359 = vperm.xlu2 %1497, %v2190_v39   ;;  %v2277_v49 = vpop.permute.xlu1 %1161 }
 0x148   :  { %vm1170_vm12 = vcmp.eq.s32.totalorder %v1858_v8, %v2277_v49 }
 0x14a   :  { %v2303_v24 = vpop.permute.xlu0 %1158 }
 0x14b   :  { %959 = vmatmul.f32.vlgmr.msra.gmra.mxu2 %v2223_v22  ;;  %1012 = vmatmul.f32.gmra.mxu3 %v2234_v47  ;;  %v2279_v13 = vpop.permute.xlu2 %1164  ;;  %vm1169_vm9 = vcmp.eq.s32.totalorder %v1858_v8, %v2303_v24 }
 0x14c   :  { %vm1171_vm13 = vcmp.eq.s32.totalorder %v1858_v8, %v2279_v13 }
 0x14f   :  { %v2281_v4 = vpop.permute.xlu1 %1167 }
 0x150   :  { %vm1172_vm14 = vcmp.eq.s32.totalorder %v1858_v8, %v2281_v4 }
 0x151   :  { %v2400_v34 = vsel %vm1172_vm14, 1.0, %v1517_v14 }
 0x153   :  { %963 = vmatmul.f32.gmra.mxu2 %v2234_v47  ;;  %1016 = vmatmul.f32.gmra.mxu3 %v638_v31  ;;  %v2314_v27 = vpop.permute.xlu0 %1193 }
 0x154   :  { %v2283_v9 = vpop.permute.xlu2 %1190 }
 0x155   :  { %vm1201_vm15 = vcmp.eq.s32.totalorder %v1858_v8, %v2283_v9 }
 0x158   :  { %v2285_v39 = vpop.permute.xlu1 %1196 }
 0x159   :  { %vm1203_vm0 = vcmp.eq.s32.totalorder %v1858_v8, %v2285_v39 }
 0x15b   :  { %967 = vmatmul.f32.gmra.mxu2 %v638_v31  ;;  %1020 = vmatmul.f32.gmra.mxu3 %v646_v59 }
 0x15c   :  { %v2287_v22 = vpop.permute.xlu2 %1199 }
 0x15d   :  { %vm1204_vm1 = vcmp.eq.s32.totalorder %v1858_v8, %v2287_v22 }
 0x161   :  { %v2289_v23 = vpop.permute.xlu1 %1222 }
 0x162   :  { %vm1233_vm2 = vcmp.eq.s32.totalorder %v1858_v8, %v2289_v23 }
 0x163   :  { %971 = vmatmul.f32.gmra.mxu2 %v646_v59 }
 0x165   :  { %v2293_v43 = vpop.permute.xlu2 %1225 }
 0x166   :  { %vm1234_vm3 = vcmp.eq.s32.totalorder %v1858_v8, %v2293_v43  ;;  %v2432_v43 = vsel %vm1233_vm2, 1.0, %v1517_v14 }
 0x169   :  { %v2295_v45 = vpop.permute.xlu1 %1231 }
 0x16e   :  { %v2299_v42 = vpop.permute.xlu2 %1254 }
 0x16f   :  { %vm1265_vm5 = vcmp.eq.s32.totalorder %v1858_v8, %v2299_v42 }
 0x172   :  { %v2301_v3 = vpop.permute.xlu1 %1257 }
 0x176   :  { %v2305_v52 = vpop.permute.xlu2 %1260 }
 0x17b   :  { %v2310_v56 = vpop.permute.xlu1 %1286 }
 0x17f   :  { %v2318_v1 = vpop.permute.xlu2 %1289 }
 0x183   :  { %v2323_v48 = vpop.permute.xlu1 %1292 }
 0x188   :  { %v2348_v19 = vpop.permute.xlu2 %1318 }
 0x189   :  { %vm1329_vm14 = vcmp.eq.s32.totalorder %v1858_v8, %v2348_v19 }
 0x1a2   :  { %v819_v58 = vpop.f32.mrf.mxu0 }
 0x1a4   :  { %v873_v46 = vpop.f32.mrf.mxu1 }
 0x1a6   :  { %v753_v18 = vpop.f32.mrf.mxu3 }
 0x1aa   :  { %v824_v17 = vpop.f32.mrf.mxu0 }
 0x1ac   :  { %v879_v53 = vpop.f32.mrf.mxu1 }
 0x1ae   :  { %v628_v10 = vpop.f32.mrf.mxu2  ;;  %v757_v21 = vpop.f32.mrf.mxu3 }
 0x1af   :  { %v754_v33 = vadd.f32 %v753_v18, %v628_v10 }
 0x1b1   :  { %v820_v2 = vadd.f32 %v819_v58, %v754_v33  ;;  %v2332_v58 = vpop.permute.xlu0 %1228 }
 0x1b2   :  { %v829_v36 = vpop.f32.mrf.mxu0 }
 0x1b3   :  { %v874_v35 = vadd.f32 %v873_v46, %v820_v2  ;;  %v2354_v2 = vsel %vm1140_vm6, 1.0, %v1517_v14 }
 0x1b4   :  { %v885_v11 = vpop.f32.mrf.mxu1 }
 0x1b6   :  { %v636_v28 = vpop.f32.mrf.mxu2  ;;  %v761_v29 = vpop.f32.mrf.mxu3 }
 0x1b7   :  { %v758_v25 = vadd.f32 %v757_v21, %v636_v28 }
 0x1b9   :  { %v825_v6 = vadd.f32 %v824_v17, %v758_v25  ;;  %v2370_v17 = vsel %vm1100_vm8, 1.0, %v1517_v14  ;;  %vm1267_vm8 = vcmp.eq.s32.totalorder %v1858_v8, %v2305_v52 }
 0x1bb   :  { %v880_v16 = vadd.f32 %v879_v53, %v825_v6  ;;  %v2385_v53 = vsel %vm1141_vm11, 1.0, %v1517_v14  ;;  %v2388_v6 = vsel %vm1170_vm12, 1.0, %v1517_v14  ;;  %vm1297_vm11 = vcmp.eq.s32.totalorder %v1858_v8, %v2310_v56 }
 0x1bc   :  { %v891_v60 = vpop.f32.mrf.mxu1  ;;  %vm1202_vm12 = vcmp.eq.s32.totalorder %v1858_v8, %v2314_v27  ;;  %v1439_v56 = vsel %vm1169_vm9, 1.0, %v1517_v14  ;;  %v2470_v27 = vsel %vm1297_vm11, 1.0, %v1517_v14 }
 0x1be   :  { %v644_v44 = vpop.f32.mrf.mxu2  ;;  %v765_v54 = vpop.f32.mrf.mxu3 }
 0x1bf   :  { %v762_v40 = vadd.f32 %v761_v29, %v644_v44  ;;  %v834_v44 = vpop.f32.mrf.mxu0 }
 0x1c1   :  { %v830_v59 = vadd.f32 %v829_v36, %v762_v40 }
 0x1c3   :  { %v886_v50 = vadd.f32 %v885_v11, %v830_v59  ;;  %v2413_v11 = vsel %vm1201_vm15, 1.0, %v1517_v14 }
 0x1c6   :  { %v652_v47 = vpop.f32.mrf.mxu2  ;;  %v1009_v5 = vpop.f32.mrf.mxu3 }
 0x1c7   :  { %v766_v37 = vadd.f32 %v765_v54, %v652_v47  ;;  %v2339_v47 = vsel %vm1103_vm4, 1.0, %v1517_v14  ;;  %vm1236_vm4 = vcmp.eq.s32.totalorder %v1858_v8, %v2295_v45 }
 0x1c8   :  { %v2439_v42 = vsel %vm1236_vm4, 1.0, %v1517_v14 }
 0x1c9   :  { %v835_v33 = vadd.f32 %v834_v44, %v766_v37  ;;  %v2420_v37 = vsel %vm1203_vm0, 1.0, %v1517_v14  ;;  %vm1298_vm0 = vcmp.eq.s32.totalorder %v1858_v8, %v2318_v1 }
 0x1cb   :  { %v892_v63 = vadd.f32 %v891_v60, %v835_v33 }
 0x1ce   :  { %v960_v38 = vpop.f32.mrf.mxu2  ;;  %v1013_v57 = vpop.f32.mrf.mxu3 }
 0x1cf   :  { %v961_v51 = vadd.f32 %v960_v38, %v874_v35  ;;  %v2377_v38 = vsel %vm1138_vm10, 1.0, %v1517_v14 }
 0x1d1   :  { %v2307_v31 = vadd.f32 %v1009_v5, %v961_v51  ;;  %v2367_v5 = vsel %vm1139_vm7, 1.0, %v1517_v14  ;;  %vm1266_vm7 = vcmp.eq.s32.totalorder %v1858_v8, %v2301_v3 }
 0x1d3   :  { %v1427_v55 = vclamps-f32 %v2307_v31, 10.0  ;;  %v1456_v31 = vsel %vm1298_vm0, 1.0, %v1517_v14 }
 0x1d5   :  { %v1032_v15 = vsub.f32 0.0, %v1427_v55 }
 0x1d6   :  { %v964_v26 = vpop.f32.mrf.mxu2  ;;  %v1017_v18 = vpop.f32.mrf.mxu3 }
 0x1d7   :  { %v1036_v32 = vmul.f32 1.442695, %v1032_v15  ;;  %v965_v0 = vadd.f32 %v964_v26, %v880_v16  ;;  %v2393_v15 = vpop.permute.xlu1 %1295 }
 0x1d8   :  { %vm1300_vm15 = vcmp.eq.s32.totalorder %v1858_v8, %v2393_v15  ;;  %v2485_v15 = vsel %vm1329_vm14, 1.0, %v1517_v14 }
 0x1d9   :  { %1499 = vpow2.f32 %v1036_v32  ;;  %v2316_v7 = vadd.f32 %v1013_v57, %v965_v0  ;;  %v2391_v57 = vsel %vm1171_vm13, 1.0, %v1517_v14  ;;  %v2404_v0 = vpop.permute.xlu0 %1263  ;;  %vm1299_vm13 = vcmp.eq.s32.totalorder %v1858_v8, %v2323_v48 }
 0x1da   :  { %v1444_v48 = vsel %vm1202_vm12, 1.0, %v1517_v14 }
 0x1db   :  { %v1428_v20 = vclamps-f32 %v2316_v7, 10.0 }
 0x1dd   :  { %v1033_v41 = vsub.f32 0.0, %v1428_v20 }
 0x1de   :  { %v968_v10 = vpop.f32.mrf.mxu2  ;;  %v1021_v40 = vpop.f32.mrf.mxu3 }
 0x1df   :  { %v2325_v21 = vpop.eup %1499  ;;  %v1038_v28 = vmul.f32 1.442695, %v1033_v41  ;;  %v969_v29 = vadd.f32 %v968_v10, %v886_v50  ;;  %v2426_v41 = vpop.permute.xlu2 %1324  ;;  %v2429_v50 = vsel %vm1204_vm1, 1.0, %v1517_v14  ;;  %vm1235_vm1 = vcmp.eq.s32.totalorder %v1858_v8, %v2332_v58 }
 0x1e0   :  { %v1044_v54 = vadd.f32 1.0, %v2325_v21  ;;  %v1047_v25 = vmul.f32 -0.5, %v2325_v21  ;;  %v1050_v9 = vand.u32 2147483647, %v2325_v21 }
 0x1e1   :  { %1501 = vpow2.f32 %v1038_v28  ;;  %v2336_v46 = vadd.f32 %v1017_v18, %v969_v29  ;;  %v2436_v28 = vsel %vm1234_vm3, 1.0, %v1517_v14  ;;  %v1322_v24 = vpop.permute.xlu0 %1321 }
 0x1e2   :  { %1503 = vlog2.f32 %v1044_v54  ;;  %v1048_v32 = vadd.f32 1.0, %v1047_v25  ;;  %vm1051_vm6 = vcmp.lt.f32.partialorder %v1050_v9, 0.0004427343  ;;  %v2442_v54 = vsel %vm1265_vm5, 1.0, %v1517_v14  ;;  %v1351_v25 = vpop.permute.xlu1 %1350 }
 0x1e3   :  { %v1429_v62 = vclamps-f32 %v2336_v46, 10.0  ;;  %vm1361_vm2 = vcmp.eq.s32.totalorder %v1858_v8, %v1351_v25  ;;  %vm1330_vm5 = vcmp.eq.s32.totalorder %v1858_v8, %v1322_v24 }
 0x1e4   :  { %v1049_v45 = vmul.f32 %v2325_v21, %v1048_v32  ;;  %v2488_v32 = vsel %vm1300_vm15, 1.0, %v1517_v14  ;;  %v1460_v58 = vsel %vm1330_vm5, 1.0, %v1517_v14 }
 0x1e5   :  { %v1034_v61 = vsub.f32 0.0, %v1429_v62 }
 0x1e6   :  { %v972_v35 = vpop.f32.mrf.mxu2 }
 0x1e7   :  { %v1502_v49 = vpop.eup %1501  ;;  %v1040_v13 = vmul.f32 1.442695, %v1034_v61  ;;  %v973_v51 = vadd.f32 %v972_v35, %v892_v63  ;;  %v2451_v35 = vsel %vm1266_vm7, 1.0, %v1517_v14  ;;  %vm1268_vm7 = vcmp.eq.s32.totalorder %v1858_v8, %v2404_v0 }
 0x1e8   :  { %v1053_v36 = vadd.f32 1.0, %v1502_v49  ;;  %v1504_v16 = vpop.eup %1503  ;;  %v1056_v4 = vmul.f32 -0.5, %v1502_v49  ;;  %v1059_v18 = vand.u32 2147483647, %v1502_v49 }
 0x1e9   :  { %1505 = vpow2.f32 %v1040_v13  ;;  %v2397_v26 = vadd.f32 %v1021_v40, %v973_v51  ;;  %v1046_v39 = vmul.f32 0.6931472, %v1504_v16  ;;  %v2464_v13 = vsel %vm1267_vm8, 1.0, %v1517_v14  ;;  %v1354_v16 = vpop.permute.xlu2 %1353  ;;  %v1328_v0 = vpop.permute.xlu0 %1327 }
 0x1ea   :  { %1507 = vlog2.f32 %v1053_v36  ;;  %v1057_v22 = vadd.f32 1.0, %v1056_v4  ;;  %vm1060_vm10 = vcmp.lt.f32.partialorder %v1059_v18, 0.0004427343  ;;  %v2482_v40 = vsel %vm1299_vm13, 1.0, %v1517_v14 }
 0x1eb   :  { %v1430_v59 = vclamps-f32 %v2397_v26, 10.0  ;;  %v1052_v33 = vsel %vm1051_vm6, %v1049_v45, %v1046_v39  ;;  %vm1362_vm4 = vcmp.eq.s32.totalorder %v1858_v8, %v1354_v16  ;;  %vm1331_vm6 = vcmp.eq.s32.totalorder %v1858_v8, %v2426_v41 }
 0x1ec   :  { %v1058_v61 = vmul.f32 %v1502_v49, %v1057_v22  ;;  %v1113_v49 = vmul.f32 %v2370_v17, %v1052_v33  ;;  %v1449_v41 = vsel %vm1235_vm1, 1.0, %v1517_v14  ;;  %v1464_v1 = vsel %vm1362_vm4, 1.0, %v1517_v14 }
 0x1ed   :  { %v1035_v23 = vsub.f32 0.0, %v1430_v59  ;;  %vm1332_vm9 = vcmp.eq.s32.totalorder %v1858_v8, %v1328_v0 }
 0x1ef   :  { %v1506_v10 = vpop.eup %1505  ;;  %v1042_v29 = vmul.f32 1.442695, %v1035_v23  ;;  %v1357_v23 = vpop.permute.xlu1 %1356 }
 0x1f0   :  { %v1508_v44 = vpop.eup %1507  ;;  %v1062_v60 = vadd.f32 1.0, %v1506_v10  ;;  %v1065_v63 = vmul.f32 -0.5, %v1506_v10  ;;  %vm1363_vm8 = vcmp.eq.s32.totalorder %v1858_v8, %v1357_v23 }
 0x1f1   :  { %v1055_v21 = vmul.f32 0.6931472, %v1508_v44  ;;  %1509 = vpow2.f32 %v1042_v29  ;;  %v1454_v44 = vsel %vm1268_vm7, 1.0, %v1517_v14 }
 0x1f2   :  { %1511 = vlog2.f32 %v1062_v60  ;;  %v1066_v51 = vadd.f32 1.0, %v1065_v63 }
 0x1f3   :  { %v1061_v3 = vsel %vm1060_vm10, %v1058_v61, %v1055_v21  ;;  %v1360_v61 = vpop.permute.xlu2 %1359 }
 0x1f4   :  { %v1114_v52 = vmul.f32 %v2373_v12, %v1061_v3  ;;  %v1068_v12 = vand.u32 2147483647, %v1506_v10  ;;  %v2477_v19 = vadd.f32 %v1428_v20, %v1061_v3  ;;  %v2495_v20 = vadd.f32 %v1427_v55, %v1052_v33 }
 0x1f5   :  { %v1067_v39 = vmul.f32 %v1506_v10, %v1066_v51  ;;  %vm1364_vm11 = vcmp.eq.s32.totalorder %v1858_v8, %v1360_v61 }
 0x1f6   :  { %v2472_v17 = vadd.f32 %v1114_v52, %v1113_v49  ;;  %vm1069_vm3 = vcmp.lt.f32.partialorder %v1068_v12, 0.0004427343  ;;  %v1182_v18 = vmul.f32 %v2388_v6, %v2477_v19  ;;  %v2520_v6 = vsel %vm1361_vm2, 1.0, %v1517_v14 }
 0x1f7   :  { %v1510_v36 = vpop.eup %1509  ;;  %v1181_v10 = vmul.f32 %v1439_v56, %v2495_v20  ;;  %v1151_v33 = vmul.f32 %v2367_v5, %v2477_v19  ;;  %v1214_v25 = vmul.f32 %v1444_v48, %v2477_v19  ;;  %v1150_v49 = vmul.f32 %v2377_v38, %v2495_v20 }
 0x1f8   :  { %v1512_v4 = vpop.eup %1511  ;;  %v1071_v7 = vadd.f32 1.0, %v1510_v36  ;;  %v1074_v22 = vmul.f32 -0.5, %v1510_v36  ;;  %v1077_v46 = vand.u32 2147483647, %v1510_v36  ;;  %v1465_v52 = vsel %vm1363_vm8, 1.0, %v1517_v14 }
 0x1f9   :  { %v1064_v9 = vmul.f32 0.6931472, %v1512_v4  ;;  %v1185_v21 = vadd.f32 %v1182_v18, %v1181_v10  ;;  %v1213_v51 = vmul.f32 %v2413_v11, %v2495_v20  ;;  %v1245_v12 = vmul.f32 %v2432_v43, %v2495_v20 }
 0x1fa   :  { %1513 = vlog2.f32 %v1071_v7  ;;  %v1075_v29 = vadd.f32 1.0, %v1074_v22  ;;  %vm1078_vm10 = vcmp.lt.f32.partialorder %v1077_v46, 0.0004427343  ;;  %v1246_v38 = vmul.f32 %v2436_v28, %v2477_v19 }
 0x1fb   :  { %v1070_v45 = vsel %vm1069_vm3, %v1067_v39, %v1064_v9  ;;  %v1277_v4 = vmul.f32 %v2442_v54, %v2495_v20  ;;  %v1217_v7 = vadd.f32 %v1214_v25, %v1213_v51  ;;  %v1278_v28 = vmul.f32 %v2451_v35, %v2477_v19 }
 0x1fc   :  { %v2511_v55 = vadd.f32 %v1429_v62, %v1070_v45  ;;  %v1461_v62 = vsel %vm1331_vm6, 1.0, %v1517_v14  ;;  %v1115_v3 = vmul.f32 %v2351_v30, %v1070_v45  ;;  %v1076_v56 = vmul.f32 %v1510_v36, %v1075_v29 }
 0x1fd   :  { %v1462_v30 = vsel %vm1332_vm9, 1.0, %v1517_v14  ;;  %v1154_v36 = vadd.f32 %v1151_v33, %v1150_v49  ;;  %v1309_v35 = vmul.f32 %v2470_v27, %v2495_v20  ;;  %v1374_v46 = vmul.f32 %v1464_v1, %v2477_v19 }
 0x1fe   :  { %v1183_v60 = vmul.f32 %v2391_v57, %v2511_v55  ;;  %v1152_v5 = vmul.f32 %v2354_v2, %v2511_v55  ;;  %v1215_v2 = vmul.f32 %v2420_v37, %v2511_v55  ;;  %v1118_v16 = vadd.f32 %v2472_v17, %v1115_v3 }
 0x1ff   :  { %v1247_v9 = vmul.f32 %v1449_v41, %v2511_v55  ;;  %v1279_v54 = vmul.f32 %v2464_v13, %v2511_v55  ;;  %v1311_v13 = vmul.f32 %v2482_v40, %v2511_v55  ;;  %v1343_v27 = vmul.f32 %v1461_v62, %v2511_v55 }
 0x200   :  { %v1514_v63 = vpop.eup %1513  ;;  %v1186_v57 = vadd.f32 %v1185_v21, %v1183_v60  ;;  %v1155_v39 = vadd.f32 %v1154_v36, %v1152_v5  ;;  %v1218_v23 = vadd.f32 %v1217_v7, %v1215_v2  ;;  %v1375_v25 = vmul.f32 %v1465_v52, %v2511_v55 }
 0x201   :  { %v1073_v24 = vmul.f32 0.6931472, %v1514_v63  ;;  %v1373_v63 = vmul.f32 %v2520_v6, %v2495_v20  ;;  %v1466_v40 = vsel %vm1364_vm11, 1.0, %v1517_v14 }
 0x203   :  { %v1079_v48 = vsel %vm1078_vm10, %v1076_v56, %v1073_v24 }
 0x204   :  { %v1083_v11 = vadd.f32 %v1430_v59, %v1079_v48  ;;  %v1116_v43 = vmul.f32 %v2339_v47, %v1079_v48  ;;  %v1310_v59 = vmul.f32 %v1456_v31, %v2477_v19  ;;  %v1249_v47 = vadd.f32 %v1246_v38, %v1245_v12 }
 0x206   :  { %v1119_v22 = vadd.f32 %v1118_v16, %v1116_v43  ;;  %v1153_v37 = vmul.f32 %v2385_v53, %v1083_v11  ;;  %v1184_v17 = vmul.f32 %v2400_v34, %v1083_v11  ;;  %v1216_v26 = vmul.f32 %v2429_v50, %v1083_v11 }
 0x207   :  { %v1248_v41 = vmul.f32 %v2439_v42, %v1083_v11  ;;  %v1250_v0 = vadd.f32 %v1249_v47, %v1247_v9  ;;  %v1281_v53 = vadd.f32 %v1278_v28, %v1277_v4  ;;  %v1342_v34 = vmul.f32 %v1460_v58, %v2477_v19 }
 0x208   :  { %v1156_v45 = vadd.f32 %v1155_v39, %v1153_v37  ;;  %v1187_v18 = vadd.f32 %v1186_v57, %v1184_v17  ;;  %1121 = vst [vmem:[%s2595_s5] sm:$0xff] %v1119_v22  ;;  %v1219_v31 = vadd.f32 %v1218_v23, %v1216_v26  ;;  %v1280_v10 = vmul.f32 %v1454_v44, %v1083_v11 }
 0x209   :  { %v1313_v29 = vadd.f32 %v1310_v59, %v1309_v35  ;;  %v1341_v42 = vmul.f32 %v2485_v15, %v2495_v20  ;;  %v1251_v58 = vadd.f32 %v1250_v0, %v1248_v41  ;;  %v1282_v60 = vadd.f32 %v1281_v53, %v1279_v54 }
 0x20a   :  { %v1188_v50 = vadd.f32 %v1187_v18, %v1156_v45  ;;  %v1312_v21 = vmul.f32 %v2488_v32, %v1083_v11  ;;  %v1344_v49 = vmul.f32 %v1462_v30, %v1083_v11  ;;  %v1377_v19 = vadd.f32 %v1374_v46, %v1373_v63 }
 0x20b   :  { %v1345_v44 = vadd.f32 %v1342_v34, %v1341_v42  ;;  %v1283_v3 = vadd.f32 %v1282_v60, %v1280_v10  ;;  %v1314_v62 = vadd.f32 %v1313_v29, %v1311_v13  ;;  %v1376_v24 = vmul.f32 %v1466_v40, %v1083_v11 }
 0x20c   :  { %v1220_v33 = vadd.f32 %v1219_v31, %v1188_v50  ;;  %v1378_v32 = vadd.f32 %v1377_v19, %v1375_v25 }
 0x20d   :  { %v1315_v56 = vadd.f32 %v1314_v62, %v1312_v21  ;;  %v1346_v5 = vadd.f32 %v1345_v44, %v1343_v27 }
 0x20e   :  { %v1252_v15 = vadd.f32 %v1251_v58, %v1220_v33  ;;  %v1379_v20 = vadd.f32 %v1378_v32, %v1376_v24 }
 0x20f   :  { %v1347_v51 = vadd.f32 %v1346_v5, %v1344_v49 }
 0x210   :  { %v1284_v1 = vadd.f32 %v1283_v3, %v1252_v15 }
 0x212   :  { %v1316_v57 = vadd.f32 %v1315_v56, %v1284_v1 }
 0x214   :  { %v1348_v6 = vadd.f32 %v1347_v51, %v1316_v57 }
 0x216   :  { %v1380_v12 = vadd.f32 %v1379_v20, %v1348_v6 }
 0x218   :  { %v1382_v55 = vmul.f32 0.125, %v1380_v12 }
 0x21a   :  { %1384 = vst [vmem:[%s2596_s6] sm:$0xff] %v1382_v55 }

</bundles_post_ra>
